<compile_context>
chip_gen: v7x
topology: tpu7x:2x2x1
jax: 0.10.0
libtpu: 0.0.40
codegen_flags: <defaults>
</compile_context>

<pallas_src>
import functools

import jax
import jax.numpy as jnp
from jax.experimental import pallas as pl
from jax.experimental.pallas import tpu as pltpu


def attention_head_kernel(x_ref, wf_ref, b1_ref, w2_ref, b2_ref, bc_ref, o_ref,
                          *, hid, inv_s):
    """Fused AttentionBlock + GAP + Linear head for one batch tile.

    x_ref : (TB, S, C)     NHWC feature-map tile (spatial flattened)
    wf_ref: (C, F_pad)     fused weight: cols [0:HID] = conv1 (C->HID),
                           col HID = classifier wc, remaining cols zero pad
    b1_ref: (1, F_pad) f32 conv1 bias (zero in cols >= HID)
    w2_ref: (1, F_pad) f32 conv2 (HID->1) weight (zero in cols >= HID)
    b2_ref: (1,)  SMEM f32 conv2 bias
    bc_ref: (1,)  SMEM f32 classifier bias
    o_ref : (TB, 128)      lane-dense logits (value replicated across lanes)
    """
    TB, S, C = x_ref.shape
    F_pad = wf_ref.shape[1]

    # One MXU pass for the whole tile: fused conv1 + classifier projection.
    x2 = x_ref[...].reshape(TB * S, C)                       # trivial dim merge
    hp = jnp.dot(x2, wf_ref[...],
                 preferred_element_type=jnp.float32)          # (TB*S, F_pad) f32
    hp3 = hp.reshape(TB, S, F_pad)                            # trivial dim split

    # conv1 + ReLU (padded / classifier lanes are masked out by w2 == 0).
    h = jnp.maximum(hp3 + b1_ref[...], 0.0)                   # (TB, S, F_pad)
    # conv2 (HID -> 1): VPU multiply + lane reduce, then sigmoid (EUP).
    z = jnp.sum(h * w2_ref[...], axis=-1, keepdims=True)      # (TB, S, 1)
    a = jax.nn.sigmoid(z + b2_ref[0])                         # attention map
    # Classifier projection x_s @ wc lives in lane `hid` of the fused matmul.
    p = hp3[:, :, hid:hid + 1]                                # (TB, S, 1)
    # Fused attention-weighted GAP + classifier.
    w = jnp.sum(a * p, axis=1)                                # (TB, 1)
    logits = w * inv_s + bc_ref[0]                            # (TB, 1)
    # Single unmasked lane-dense store per grid step.
    o_ref[...] = jnp.broadcast_to(logits, o_ref.shape).astype(o_ref.dtype)


def _pick_batch_tile(B, S, C, itemsize, target_bytes=4 << 20):
    """Largest multiple-of-8 divisor of B with ~target_bytes of x per step
    and at least 2 grid steps (pipelining / v7x two-TC split)."""
    if B <= 8:
        return B
    cands = [tb for tb in range(8, B + 1, 8) if B % tb == 0]
    if not cands:
        return B
    best = cands[0]
    for tb in cands:
        if tb * S * C * itemsize <= target_bytes and (B // tb) >= 2:
            best = tb
    return best


def custom_attention_forward(x_nchw, params, *, batch_tile=None,
                             compute_dtype=jnp.bfloat16):
    """x_nchw: (B, C, H, W) backbone feature map (NCHW, PyTorch convention).

    params = (w1 (C, HID), b1 (HID,), w2 (HID,), b2 (), wc (C,), bc ())
    Returns (B, 1) float32 logits.
    """
    B, C, H, W = x_nchw.shape
    S = H * W
    w1, b1, w2, b2, wc, bc = params
    HID = w1.shape[1]

    # One-time producer-side layout change: NCHW -> NHWC so the kernel's x
    # tile is lane-dense (C is a multiple of 128).  Ideally the backbone emits
    # NHWC directly and this transpose disappears.
    x = jnp.transpose(x_nchw, (0, 2, 3, 1)).reshape(B, S, C).astype(compute_dtype)

    # Fused weight: one MXU pass yields both conv1 activations and x @ wc.
    F = HID + 1
    F_pad = max(128, ((F + 127) // 128) * 128)               # lane-align
    wf = jnp.concatenate([w1, wc[:, None]], axis=1)          # (C, F)
    wf = jnp.pad(wf, ((0, 0), (0, F_pad - F))).astype(compute_dtype)  # (C, F_pad)

    # Epilogue params stay f32 (never touch the MXU).
    b1p = jnp.pad(b1.astype(jnp.float32), (0, F_pad - HID)).reshape(1, F_pad)
    w2p = jnp.pad(w2.astype(jnp.float32), (0, F_pad - HID)).reshape(1, F_pad)
    b2s = jnp.asarray(b2, jnp.float32).reshape(1)
    bcs = jnp.asarray(bc, jnp.float32).reshape(1)

    itemsize = jnp.dtype(compute_dtype).itemsize
    TB = batch_tile if batch_tile is not None else _pick_batch_tile(B, S, C, itemsize)
    assert B % TB == 0, "batch must be divisible by the batch tile"
    assert TB % 8 == 0 or TB == B, "output batch tile must satisfy the (8,128) rule"

    kernel = functools.partial(attention_head_kernel, hid=HID, inv_s=1.0 / float(S))

    flops = 2 * B * S * C * F_pad + 4 * B * S * F_pad
    bytes_accessed = (B * S * C * itemsize + C * F_pad * itemsize
                      + 2 * F_pad * 4 + B * 128 * 4)

    out_padded = pl.pallas_call(
        kernel,
        out_shape=jax.ShapeDtypeStruct((B, 128), jnp.float32),
        grid=(B // TB,),
        in_specs=[
            pl.BlockSpec((TB, S, C), lambda i: (i, 0, 0)),        # batch-tiled x
            pl.BlockSpec((C, F_pad), lambda i: (0, 0)),           # resident fused weight
            pl.BlockSpec((1, F_pad), lambda i: (0, 0)),           # b1 (f32)
            pl.BlockSpec((1, F_pad), lambda i: (0, 0)),           # w2 (f32)
            pl.BlockSpec(memory_space=pltpu.MemorySpace.SMEM),    # b2 scalar
            pl.BlockSpec(memory_space=pltpu.MemorySpace.SMEM),    # bc scalar
        ],
        out_specs=pl.BlockSpec((TB, 128), lambda i: (i, 0)),      # lane-dense logits
        compiler_params=pltpu.CompilerParams(
            dimension_semantics=("parallel",),                    # megacore / 2-TC split
        ),
        cost_estimate=pl.CostEstimate(
            flops=flops, transcendentals=B * S, bytes_accessed=bytes_accessed),
    )(x, wf, b1p, w2p, b2s, bcs)

    return out_padded[:, :1]


def ref_forward(x_nchw, params):
    """Pure-JAX reference (mirrors the PyTorch forward exactly)."""
    w1, b1, w2, b2, wc, bc = params
    x = jnp.transpose(x_nchw, (0, 2, 3, 1))                               # (B,H,W,C)
    h = jnp.maximum(jnp.einsum("bhwc,cd->bhwd", x, w1) + b1, 0.0)         # Conv1x1+ReLU
    a = jax.nn.sigmoid(jnp.einsum("bhwd,d->bhw", h, w2)[..., None] + b2)  # Conv1x1+Sigmoid
    y = x * a                                                             # x * attention_map
    g = jnp.mean(y, axis=(1, 2))                                          # GAP + flatten
    return g @ wc[:, None] + bc                                           # Dropout(eval)+Linear


if __name__ == "__main__":
    key = jax.random.PRNGKey(0)
    # Small, forward-consistent shapes: in_features scaled 1280 -> 128, spatial 8x8.
    B, C, H, W = 16, 128, 8, 8
    HID = C // 8   # in_features // 8 of the AttentionBlock

    ks = jax.random.split(key, 7)
    x = jax.random.normal(ks[0], (B, C, H, W), jnp.float32)

    # Deterministic synthetic parameters (shapes dictated by the module's
    # __init__), stored in (in, out) layout.
    w1 = jax.random.normal(ks[1], (C, HID), jnp.float32) * 0.05   # Conv2d(C, C//8, 1) weight
    b1 = jax.random.normal(ks[2], (HID,), jnp.float32) * 0.05     # its bias
    w2 = jax.random.normal(ks[3], (HID,), jnp.float32) * 0.05     # Conv2d(C//8, 1, 1) weight
    b2 = jax.random.normal(ks[4], (), jnp.float32) * 0.05         # its bias
    wc = jax.random.normal(ks[5], (C,), jnp.float32) * 0.05       # Linear(C, 1) weight
    bc = jax.random.normal(ks[6], (), jnp.float32) * 0.05         # Linear bias
    params = (w1, b1, w2, b2, wc, bc)

    expected = ref_forward(x, params)

    # f32 path: tight check of the fused math.
    out_f32 = custom_attention_forward(x, params, compute_dtype=jnp.float32)
    jax.block_until_ready(out_f32)
    assert out_f32.shape == (B, 1), out_f32.shape
    err_f32 = float(jnp.max(jnp.abs(out_f32 - expected)))
    assert jnp.allclose(out_f32, expected, atol=1e-4, rtol=1e-4), err_f32

    # Default bf16 path (HBM-traffic optimized): looser tolerance is expected
    # numeric behaviour of the reduced input precision, not a kernel bug.
    out_bf16 = custom_attention_forward(x, params)
    jax.block_until_ready(out_bf16)
    assert out_bf16.shape == (B, 1), out_bf16.shape
    err_bf16 = float(jnp.max(jnp.abs(out_bf16 - expected)))
    assert jnp.allclose(out_bf16, expected, atol=5e-2, rtol=5e-2), err_bf16

    print("KERNEL_OK")
</pallas_src>

<mosaic_0001>
module attributes {stable_mosaic.version = 11 : i64} {
  func.func @attention_head_kernel(%arg0: i32, %arg1: memref<8x64x128xf32, #tpu.memory_space<vmem>>, %arg2: memref<128x128xf32, #tpu.memory_space<vmem>>, %arg3: memref<1x128xf32, #tpu.memory_space<vmem>>, %arg4: memref<1x128xf32, #tpu.memory_space<vmem>>, %arg5: memref<1xf32, #tpu.memory_space<smem>>, %arg6: memref<1xf32, #tpu.memory_space<smem>>, %arg7: memref<8x128xf32, #tpu.memory_space<vmem>>) attributes {dimension_semantics = [#tpu.dimension_semantics<parallel>], iteration_bounds = array<i64: 2>, scalar_prefetch = 0 : i64, scratch_operands = 0 : i64, tpu.core_type = #tpu.core_type<tc>, window_params = [{transform_indices = @transform_0, window_bounds = array<i64: 8, 64, 128>}, {pipeline_mode = #tpu.pipeline_mode<synchronous>, transform_indices = @transform_1, window_bounds = array<i64: 128, 128>}, {pipeline_mode = #tpu.pipeline_mode<synchronous>, transform_indices = @transform_2, window_bounds = array<i64: 1, 128>}, {pipeline_mode = #tpu.pipeline_mode<synchronous>, transform_indices = @transform_3, window_bounds = array<i64: 1, 128>}, {transform_indices = @transform_4, window_bounds = array<i64: 1>}, {transform_indices = @transform_5, window_bounds = array<i64: 1>}, {transform_indices = @transform_6, window_bounds = array<i64: 8, 128>}]} {
    %c0 = arith.constant 0 : index
    %c0_0 = arith.constant 0 : index
    %c0_1 = arith.constant 0 : index
    %0 = vector.load %arg1[%c0, %c0_0, %c0_1] : memref<8x64x128xf32, #tpu.memory_space<vmem>>, vector<8x64x128xf32>
    %1 = vector.shape_cast %0 : vector<8x64x128xf32> to vector<512x128xf32>
    %c0_2 = arith.constant 0 : index
    %c0_3 = arith.constant 0 : index
    %2 = vector.load %arg2[%c0_2, %c0_3] : memref<128x128xf32, #tpu.memory_space<vmem>>, vector<128x128xf32>
    %cst = arith.constant dense<0.000000e+00> : vector<512x128xf32>
    %3 = tpu.matmul %1, %2, %cst {dimension_numbers = #tpu.dot_dimension_numbers<[1], [0], [0], [1], [0, 0, 1, 1], [], []>} : vector<512x128xf32>, vector<128x128xf32>, vector<512x128xf32> -> vector<512x128xf32>
    %4 = vector.shape_cast %3 : vector<512x128xf32> to vector<8x64x128xf32>
    %c0_4 = arith.constant 0 : index
    %c0_5 = arith.constant 0 : index
    %5 = vector.load %arg3[%c0_4, %c0_5] : memref<1x128xf32, #tpu.memory_space<vmem>>, vector<1x128xf32>
    %6 = vector.shape_cast %5 : vector<1x128xf32> to vector<1x1x128xf32>
    %7 = vector.broadcast %6 : vector<1x1x128xf32> to vector<8x64x128xf32>
    %8 = arith.addf %4, %7 : vector<8x64x128xf32>
    %cst_6 = arith.constant 0.000000e+00 : f32
    %9 = vector.broadcast %cst_6 : f32 to vector<8x64x128xf32>
    %10 = arith.maximumf %8, %9 : vector<8x64x128xf32>
    %c0_7 = arith.constant 0 : index
    %c0_8 = arith.constant 0 : index
    %11 = vector.load %arg4[%c0_7, %c0_8] : memref<1x128xf32, #tpu.memory_space<vmem>>, vector<1x128xf32>
    %12 = vector.shape_cast %11 : vector<1x128xf32> to vector<1x1x128xf32>
    %13 = vector.broadcast %12 : vector<1x1x128xf32> to vector<8x64x128xf32>
    %14 = arith.mulf %10, %13 : vector<8x64x128xf32>
    %cst_9 = arith.constant dense<0.000000e+00> : vector<8x64xf32>
    %15 = vector.multi_reduction <add>, %14, %cst_9 [2] : vector<8x64x128xf32> to vector<8x64xf32>
    %16 = vector.shape_cast %15 : vector<8x64xf32> to vector<8x64x1xf32>
    %c0_10 = arith.constant 0 : index
    %17 = memref.load %arg5[%c0_10] : memref<1xf32, #tpu.memory_space<smem>>
    %18 = vector.broadcast %17 : f32 to vector<8x64x1xf32>
    %19 = arith.addf %16, %18 : vector<8x64x1xf32>
    %20 = arith.negf %19 : vector<8x64x1xf32>
    %21 = math.exp %20 : vector<8x64x1xf32>
    %cst_11 = arith.constant 1.000000e+00 : f32
    %22 = vector.broadcast %cst_11 : f32 to vector<8x64x1xf32>
    %23 = arith.addf %22, %21 : vector<8x64x1xf32>
    %24 = arith.divf %22, %23 : vector<8x64x1xf32>
    %25 = vector.extract_strided_slice %4 {offsets = [0, 0, 16], sizes = [8, 64, 1], strides = [1, 1, 1]} : vector<8x64x128xf32> to vector<8x64x1xf32>
    %26 = arith.mulf %24, %25 : vector<8x64x1xf32>
    %cst_12 = arith.constant dense<0.000000e+00> : vector<8x1xf32>
    %27 = vector.multi_reduction <add>, %26, %cst_12 [1] : vector<8x64x1xf32> to vector<8x1xf32>
    %cst_13 = arith.constant 1.562500e-02 : f32
    %28 = vector.broadcast %cst_13 : f32 to vector<8x1xf32>
    %29 = arith.mulf %27, %28 : vector<8x1xf32>
    %c0_14 = arith.constant 0 : index
    %30 = memref.load %arg6[%c0_14] : memref<1xf32, #tpu.memory_space<smem>>
    %31 = vector.broadcast %30 : f32 to vector<8x1xf32>
    %32 = arith.addf %29, %31 : vector<8x1xf32>
    %33 = vector.shape_cast %32 : vector<8x1xf32> to vector<8x1xf32>
    %34 = vector.broadcast %33 : vector<8x1xf32> to vector<8x128xf32>
    %c0_15 = arith.constant 0 : index
    %c0_16 = arith.constant 0 : index
    %35 = vector.load %arg7[%c0_15, %c0_16] : memref<8x128xf32, #tpu.memory_space<vmem>>, vector<8x128xf32>
    tpu.vector_store %arg7[%c0_15, %c0_16], %34 {strides = array<i32>} : memref<8x128xf32, #tpu.memory_space<vmem>>, vector<8x128xf32>,
    return
  }
  func.func @transform_0(%arg0: i32) -> (i32, i32, i32) {
    %c0_i32 = arith.constant 0 : i32
    %c0_i32_0 = arith.constant 0 : i32
    %c0_i32_1 = arith.constant 0 : i32
    return %arg0, %c0_i32, %c0_i32_0 : i32, i32, i32
  }
  func.func @transform_1(%arg0: i32) -> (i32, i32) {
    %c0_i32 = arith.constant 0 : i32
    %c0_i32_0 = arith.constant 0 : i32
    %c0_i32_1 = arith.constant 0 : i32
    return %c0_i32, %c0_i32_0 : i32, i32
  }
  func.func @transform_2(%arg0: i32) -> (i32, i32) {
    %c0_i32 = arith.constant 0 : i32
    %c0_i32_0 = arith.constant 0 : i32
    %c0_i32_1 = arith.constant 0 : i32
    return %c0_i32, %c0_i32_0 : i32, i32
  }
  func.func @transform_3(%arg0: i32) -> (i32, i32) {
    %c0_i32 = arith.constant 0 : i32
    %c0_i32_0 = arith.constant 0 : i32
    %c0_i32_1 = arith.constant 0 : i32
    return %c0_i32, %c0_i32_0 : i32, i32
  }
  func.func @transform_4(%arg0: i32) -> i32 {
    %c0_i32 = arith.constant 0 : i32
    %c0_i32_0 = arith.constant 0 : i32
    return %c0_i32 : i32
  }
  func.func @transform_5(%arg0: i32) -> i32 {
    %c0_i32 = arith.constant 0 : i32
    %c0_i32_0 = arith.constant 0 : i32
    return %c0_i32 : i32
  }
  func.func @transform_6(%arg0: i32) -> (i32, i32) {
    %c0_i32 = arith.constant 0 : i32
    %c0_i32_0 = arith.constant 0 : i32
    return %arg0, %c0_i32 : i32, i32
  }
}

</mosaic_0001>

<bundles_post_ra>
// kernel: tpu_custom_call.1
= control target key start
LH: loop header
LB: loop body
LE: loop exit
PB: predicated region body
PF: predicated region fallthrough
CT: control target
= control target key end

     0   :  { %s3755_s0 = inlined_call_operand.hbm [shape: f32[16,64,128], index: 0, kind: input, shape index: {}]   ;;  %s3756_s1 = inlined_call_operand.hbm [shape: f32[128,128], index: 1, kind: input, shape index: {}]   ;;  %s3757_s2 = inlined_call_operand.vmem [shape: f32[1,128], index: 2, kind: input, shape index: {}]   ;;  %s3758_s3 = inlined_call_operand.vmem [shape: f32[1,128], index: 3, kind: input, shape index: {}]   ;;  %s3759_s4 = inlined_call_operand.<no memory space> [shape: f32[1], index: 4, kind: input, shape index: {}]   ;;  %s3760_s5 = inlined_call_operand.<no memory space> [shape: f32[1], index: 5, kind: input, shape index: {}]   ;;  %s3761_s6 = inlined_call_operand.hbm [shape: f32[16,128], index: 6, kind: output, shape index: {}]  }
   0x1   :  { %11 = sst [smem:[#allocation2]] %s3759_s4 }
   0x2   :  { %12 = sst [smem:[#allocation3]] %s3760_s5 }
   0x3   :  { %13 = vsyncpa [#allocation5], 0 }
   0x4   :  { %15 = vsyncpa [#allocation5 + $0x1], 0 }
   0x5   :  { %16 = vsyncpa [#allocation8], 0 }
   0x6   :  { %17 = vsyncpa [#allocation6], 0 }
   0x7   :  { %19 = vsyncpa [#allocation6 + $0x1], 0  ;;  %s2766_s25 = smov 0   ;;  %s2768_s26 = smov 0  }
   0x8   :  { %s2770_s27 = smov 0   ;;  %s2772_s28 = smov 0  }
   0x9 LB: > { %s2787_s4 = sadd.s32 4294967295, %s2717_s28   ;;  %s1931_s5 = sadd.s32 4294967294, %s2717_s28   ;;  %s2717_s28 = sphi %s2772_s28, %s3927_s28   ;;  %s2713_s27 = sphi %s2770_s27, %s3926_s27   ;;  %s2709_s26 = sphi %s2768_s26, %s3925_s26   ;;  %s2705_s25 = sphi %s2766_s25, %s3924_s25  }
   0xa   : > { %p45_p0 = scmp.ne.s32.totalorder %s2709_s26, %s2705_s25  ;;  %p3762_p1 = scmp.eq.s32.totalorder %s2787_s4, 0 }
   0xb   : > { %p180_p3 = scmp.eq.s32.totalorder %s1931_s5, 1  ;;  %p1932_p5 = scmp.ge.s32.totalorder %s2717_s28, 1 }
   0xc   : > { %p2796_p4 = por %p3762_p1, %p45_p0  ;;  %p187_p7 = scmp.lt.s32.totalorder %s2717_s28, 3 }
   0xd   : > { %p2801_p6 = por %p180_p3, %p45_p0  ;;  %s2719_s8 = smov [#allocation7]  }
   0xe   : > { %s3813_s29 = scalar_select %p2796_p4, 1, 0 }
   0xf   : > { %s3814_s30 = scalar_select %p2801_p6, 1, 0 }
  0x10   : > { %p2806_p8 = pnand %p1932_p5, %p187_p7  ;;  %s199_s9 = sshll.u32 %s2719_s8, 4  ;;  %s2810_s9 = int_to_ptr.vmem [resolvable:$true] %s199_s9 }
  0x11   : > { %s2822_s11 = sadd.s32 1, %s2717_s28   ;;  %s32_s12 = sadd.s32 1, %s2713_s27 }
  0x12   : > { %s3815_s7 = scalar_select %p2806_p8, 1, 0 }
  0x13   : > { %p2279_p9 = pneg %p2806_p8  ;;  %s29_s13 = ssub.s32 %s2717_s28, %s2822_s11 }
  0x14   : > { %s2589_s16 = scalar_lea.hbm %s3756_s1, 2048 }
  0x15   : > { %p2817_p11 = pnand %p2279_p9, %p3762_p1  ;;  %p2590_p12 = scmp.ne.s32.totalorder %s3756_s1, %s2589_s16 }
  0x16   : > { %p2596_p5 = scmp.lt.u32.totalorder %s2589_s16, %s3756_s1 }
  0x17   : > { %p2591_p13 = pneg %p2817_p11 }
  0x19   : > { %p2592_p0 = pnand %p2591_p13, %p2590_p12 }
  0x1b   : > { %p2593_p3 = pneg %p2592_p0 }
  0x1d   : > { %p2598_p7 = pnand %p2596_p5, %p2593_p3 }
  0x1f   : > { %2601 = shalt.err (!%p2598_p7)
}
  0x20   : > { %s2602_s21 = scalar_lea.vmem %s2810_s9, 2048  ;;  %p2610_p2 = scmp.lt.s32.totalorder %s2810_s9, %s2810_s9 }
  0x21   : > { %p2603_p9 = scmp.ne.s32.totalorder %s2810_s9, %s2602_s21  ;;  %p2611_p6 = scmp.lt.s32.totalorder %s2602_s21, %s2602_s21 }
  0x23   : > { %p2605_p10 = pnand %p2603_p9, %p2591_p13  ;;  %p2612_p4 = por %p2611_p6, %p2610_p2 }
  0x25   : > { %p2606_p1 = pneg %p2605_p10 }
  0x27   : > { %p2613_p8 = pnand %p2612_p4, %p2606_p1 }
  0x29   : > { %2616 = shalt.err (!%p2613_p8)
}
  0x2a   : > { %s2720_s22 = smov 128   ;;  %s2721_s23 = smov 8  }
  0x2b   : > { %2282 = dma.hbm_to_vmem [thread:$0]  (!%p2817_p11), %s3756_s1, 2048, %s2810_s9, [#allocation8], %s2720_s22, %s2720_s22, %s2721_s23  }
  0x2c   : > { %p30_p1 = scmp.eq.s32.totalorder %s29_s13, 0  ;;  %p39_p2 = scmp.ne.s32.totalorder %s2713_s27, %s2709_s26 }
  0x2d   : > { %p40_p4 = scmp.eq.s32.totalorder %s2717_s28, 0  ;;  %p2292_p6 = scmp.lt.s32.totalorder %s2717_s28, 2 }
  0x2e   : > { %s2856_s8 = scalar_select %p30_p1, %s2713_s27, %s32_s12  }
  0x2f   : > { %p41_p8 = por %p40_p4, %p39_p2  ;;  %p3817_p10 = scmp.eq.s32.totalorder %s2787_s4, 1 }
  0x30   : > { %s225_s10 = sand.u32 1, %s2713_s27   ;;  %s2014_s15 = sshll.u32 %s2717_s28, 13 }
  0x31   : > { %p2860_p12 = por %p3817_p10, %p39_p2  ;;  %s1935_s16 = sshll.u32 %s225_s10, 9 }
  0x32   : > { %s2869_s19 = scalar_lea.hbm %s3755_s0, %s2014_s15  ;;  %s229_s9 = scalar_lea.vmem [#allocation4], %s1935_s16 }
  0x33   : > { %s237_s12 = sshll.u32 %s229_s9, 4  ;;  %p2871_p11 = pnand %p2292_p6, %p41_p8  ;;  %s2875_s12 = int_to_ptr.vmem [resolvable:$true] %s237_s12 }
  0x34   : > { %s2877_s20 = scalar_lea.sflag [#allocation5], %s225_s10  ;;  %s2617_s21 = scalar_lea.hbm %s2869_s19, 8192 }
  0x35   : > { %p2618_p13 = scmp.ne.s32.totalorder %s2869_s19, %s2617_s21  ;;  %p2619_p0 = pneg %p2871_p11 }
  0x36   : > { %s2622_s15 = scalar_lea.hbm %s3755_s0, 16384  ;;  %p2623_p7 = scmp.lt.u32.totalorder %s2869_s19, %s3755_s0 }
  0x37   : > { %p2620_p3 = pnand %p2619_p0, %p2618_p13  ;;  %p2624_p9 = scmp.lt.u32.totalorder %s2622_s15, %s2617_s21 }
  0x38   : > { %p2626_p2 = scmp.lt.u32.totalorder %s2617_s21, %s2869_s19 }
  0x39   : > { %p2621_p5 = pneg %p2620_p3  ;;  %p2625_p1 = por %p2624_p9, %p2623_p7 }
  0x3b   : > { %p2627_p4 = por %p2626_p2, %p2625_p1 }
  0x3d   : > { %p2628_p6 = pnand %p2627_p4, %p2621_p5 }
  0x3f   : > { %2631 = shalt.err (!%p2628_p6)
}
  0x40   : > { %s2632_s10 = scalar_lea.vmem %s2875_s12, 8192  ;;  %s2722_s18 = smov [#allocation4]  }
  0x41   : > { %p2633_p8 = scmp.ne.s32.totalorder %s2875_s12, %s2632_s10  ;;  %s2637_s9 = sshll.u32 %s2722_s18, 4  ;;  %s2638_s9 = int_to_ptr.vmem [resolvable:$false] %s2637_s9 }
  0x42   : > { %s2639_s24 = scalar_lea.vmem %s2638_s9, 16384  ;;  %p2640_p3 = scmp.lt.s32.totalorder %s2875_s12, %s2638_s9 }
  0x43   : > { %p2635_p10 = pnand %p2633_p8, %p2619_p0  ;;  %p2641_p7 = scmp.lt.s32.totalorder %s2639_s24, %s2632_s10 }
  0x45   : > { %p2636_p13 = pneg %p2635_p10  ;;  %p2642_p9 = por %p2641_p7, %p2640_p3 }
  0x47   : > { %p2643_p1 = pnand %p2642_p9, %p2636_p13 }
  0x49   : > { %2646 = shalt.err (!%p2643_p1)
}
  0x4a   : > { %2286 = dma.hbm_to_vmem [thread:$0]  (!%p2871_p11), %s2869_s19, 8192, %s2875_s12, %s2877_s20, %s2720_s22, %s2720_s22, %s2721_s23  }
  0x4b   : > { %p3820_p0 = scmp.ne.s32.totalorder %s3815_s7, 0 }
  0x4d   : > { %249 = sbr.rel (%p3820_p0) target bundleno = 820 (0x334), region = 44 }
  0x54   : > { %s2911_s21 = sand.u32 1, %s2709_s26   ;;  %p3821_p5 = scmp.ne.s32.totalorder %s3813_s29, 0 }
  0x55   : > { %s1940_s5 = sshll.u32 %s2911_s21, 9  ;;  %s252_s15 = scalar_lea.sflag [#allocation5], %s2911_s21 }
  0x56   : > { %s2915_s16 = scalar_lea.vmem [#allocation4], %s1940_s5 }
  0x57   : > { %2692 = dma.done.wait (%p3821_p5), %s252_s15, 8192  }
  0x58   : > { %2694 = vsyncadd (%p3821_p5), %s252_s15, 4294959104  ;;  %p3822_p11 = scmp.eq.s32.totalorder %s2787_s4, 0 }
  0x5a   : > { %2696 = dma.done.wait (%p3822_p11), [#allocation8], 2048   ;;  %p3823_p2 = pmov %p3822_p11 }
  0x5b   : > { %v353_v0 = vld [vmem:[#allocation7] sm:$0xff]  ;;  %v354_v1 = vld [vmem:[#allocation7 + $0x8] sm:$0xff]  ;;  %v355_v2 = vld [vmem:[#allocation7 + $0x10] sm:$0xff]  ;;  %s1088_s19 = sld [smem:[#allocation2]]  ;;  %vm1602_vm0 = vcmask 138368   ;;  %s1942_s13 = sshll.u32 %s2911_s21, 3 }
  0x5c   : > { %2698 = vsyncadd (%p3823_p2), [#allocation8], 4294965248  ;;  %v2223_v3 = vpack.c.bf16 %v354_v1, %v353_v0  ;;  %v356_v4 = vld [vmem:[#allocation7 + $0x18] sm:$0xff]  ;;  %v357_v6 = vld [vmem:[#allocation7 + $0x20] sm:$0xff]  ;;  %s3511_s12 = sld [smem:[#allocation3]]  ;;  %vm1821_vm1 = vcmask 1041409  }
  0x5d   : > { %v2227_v5 = vpack.c.bf16 %v356_v4, %v355_v2  ;;  %v358_v7 = vld [vmem:[#allocation7 + $0x28] sm:$0xff]  ;;  %v289_v9 = vld [vmem:[%s2915_s16] sm:$0xff]  ;;  %v359_v11 = vld [vmem:[#allocation7 + $0x30] sm:$0xff]  ;;  %vm1823_vm2 = vcmask 1042434   ;;  %vm1825_vm3 = vcmask 1043459   ;;  %vm1827_vm4 = vcmask 1044484  }
  0x5e   : > { %2224 = vmatprep.subr.bf16.mxu0 %v2223_v3  ;;  %2255 = vmatprep.subr.bf16.mxu1 %v2223_v3  ;;  %v2231_v8 = vpack.c.bf16 %v358_v7, %v357_v6  ;;  %v321_v10 = vld [vmem:[%s2915_s16 + $0x100] sm:$0xff]  ;;  %v360_v12 = vld [vmem:[#allocation7 + $0x38] sm:$0xff]  ;;  %v362_v15 = vld [vmem:[#allocation7 + $0x48] sm:$0xff]  ;;  %vm1829_vm5 = vcmask 1045509   ;;  %vm1831_vm6 = vcmask 1046534   ;;  %s2010_s20 = sshll.u32 %s2787_s4, 7 }
  0x5f   : > { %2226 = vmatpush3.bf16.msra.mxu0 %v2223_v3  ;;  %2263 = vmatpush3.bf16.msra.mxu1 %v2223_v3  ;;  %v2235_v13 = vpack.c.bf16 %v360_v12, %v359_v11  ;;  %v361_v14 = vld [vmem:[#allocation7 + $0x40] sm:$0xff]  ;;  %v363_v17 = vld [vmem:[#allocation7 + $0x50] sm:$0xff]  ;;  %v364_v18 = vld [vmem:[#allocation7 + $0x58] sm:$0xff]  ;;  %s287_s17 = scalar_lea.vmem [#allocation9], %s1942_s13  ;;  %vm1833_vm7 = vcmask 1047559   ;;  %s3711_s24 = scalar_lea.hbm %s3761_s6, %s2010_s20 }
  0x60   : > { %2228 = vmatprep.subr.bf16.mxu0 %v2227_v5  ;;  %2256 = vmatprep.subr.bf16.mxu1 %v2227_v5  ;;  %v2239_v16 = vpack.c.bf16 %v362_v15, %v361_v14  ;;  %v2243_v19 = vpack.c.bf16 %v364_v18, %v363_v17  ;;  %v365_v20 = vld [vmem:[#allocation7 + $0x60] sm:$0xff]  ;;  %v366_v21 = vld [vmem:[#allocation7 + $0x68] sm:$0xff]  ;;  %v367_v23 = vld [vmem:[#allocation7 + $0x70] sm:$0xff]  ;;  %s1851_s10 = sshll.u32 %s287_s17, 4  ;;  %s1838_s4 = scalar_lea.sflag [#allocation6], %s2911_s21  ;;  %s3713_s10 = int_to_ptr.vmem [resolvable:$true] %s1851_s10 }
  0x61   : > { %2127 = vmatprep.mubr.f32.mxu0 %v289_v9  ;;  %2175 = vmatprep.mubr.f32.mxu1 %v321_v10  ;;  %v2247_v22 = vpack.c.bf16 %v366_v21, %v365_v20  ;;  %v368_v24 = vld [vmem:[#allocation7 + $0x78] sm:$0xff]  ;;  %v290_v26 = vld [vmem:[%s2915_s16 + $0x8] sm:$0xff]  ;;  %v291_v28 = vld [vmem:[%s2915_s16 + $0x10] sm:$0xff]  ;;  %s2647_s5 = scalar_lea.vmem %s3713_s10, 128  ;;  %s2724_s15 = smov [#allocation9]  }
  0x62   : > { %v2251_v25 = vpack.c.bf16 %v368_v24, %v367_v23  ;;  %v322_v27 = vld [vmem:[%s2915_s16 + $0x108] sm:$0xff]  ;;  %v323_v29 = vld [vmem:[%s2915_s16 + $0x110] sm:$0xff]  ;;  %v292_v30 = vld [vmem:[%s2915_s16 + $0x18] sm:$0xff]  ;;  %p2648_p4 = scmp.ne.s32.totalorder %s3713_s10, %s2647_s5 }
  0x63   : > { %2230 = vmatpush3.bf16.msra.mxu0 %v2227_v5  ;;  %2264 = vmatpush3.bf16.msra.mxu1 %v2227_v5  ;;  %v324_v31 = vld [vmem:[%s2915_s16 + $0x118] sm:$0xff]  ;;  %v325_v32 = vld [vmem:[%s2915_s16 + $0x120] sm:$0xff]  ;;  %v326_v34 = vld [vmem:[%s2915_s16 + $0x128] sm:$0xff] }
  0x64   : > { %2232 = vmatprep.subr.bf16.mxu0 %v2231_v8  ;;  %2257 = vmatprep.subr.bf16.mxu1 %v2231_v8  ;;  %v293_v33 = vld [vmem:[%s2915_s16 + $0x20] sm:$0xff]  ;;  %v294_v35 = vld [vmem:[%s2915_s16 + $0x28] sm:$0xff]  ;;  %v327_v36 = vld [vmem:[%s2915_s16 + $0x130] sm:$0xff]  ;;  %p2649_p6 = pnand %p2648_p4, %p2860_p12 }
  0x65   : > { %v295_v37 = vld [vmem:[%s2915_s16 + $0x30] sm:$0xff]  ;;  %v328_v38 = vld [vmem:[%s2915_s16 + $0x138] sm:$0xff]  ;;  %v329_v40 = vld [vmem:[%s2915_s16 + $0x140] sm:$0xff] }
  0x66   : > { %v296_v39 = vld [vmem:[%s2915_s16 + $0x38] sm:$0xff]  ;;  %v297_v41 = vld [vmem:[%s2915_s16 + $0x40] sm:$0xff]  ;;  %v330_v42 = vld [vmem:[%s2915_s16 + $0x148] sm:$0xff]  ;;  %p2650_p8 = pneg %p2649_p6 }
  0x67   : > { %2234 = vmatpush3.bf16.msra.mxu0 %v2231_v8  ;;  %2265 = vmatpush3.bf16.msra.mxu1 %v2231_v8  ;;  %v298_v43 = vld [vmem:[%s2915_s16 + $0x48] sm:$0xff]  ;;  %v299_v44 = vld [vmem:[%s2915_s16 + $0x50] sm:$0xff]  ;;  %v300_v46 = vld [vmem:[%s2915_s16 + $0x58] sm:$0xff] }
  0x68   : > { %2236 = vmatprep.subr.bf16.mxu0 %v2235_v13  ;;  %2258 = vmatprep.subr.bf16.mxu1 %v2235_v13  ;;  %v331_v45 = vld [vmem:[%s2915_s16 + $0x150] sm:$0xff]  ;;  %v332_v47 = vld [vmem:[%s2915_s16 + $0x158] sm:$0xff]  ;;  %v301_v48 = vld [vmem:[%s2915_s16 + $0x60] sm:$0xff] }
  0x69   : > { %v333_v49 = vld [vmem:[%s2915_s16 + $0x160] sm:$0xff]  ;;  %v302_v50 = vld [vmem:[%s2915_s16 + $0x68] sm:$0xff]  ;;  %v303_v52 = vld [vmem:[%s2915_s16 + $0x70] sm:$0xff] }
  0x6a   : > { %v334_v51 = vld [vmem:[%s2915_s16 + $0x168] sm:$0xff]  ;;  %v335_v53 = vld [vmem:[%s2915_s16 + $0x170] sm:$0xff]  ;;  %v304_v54 = vld [vmem:[%s2915_s16 + $0x78] sm:$0xff] }
  0x6b   : > { %2238 = vmatpush3.bf16.msra.mxu0 %v2235_v13  ;;  %2266 = vmatpush3.bf16.msra.mxu1 %v2235_v13  ;;  %v336_v55 = vld [vmem:[%s2915_s16 + $0x178] sm:$0xff]  ;;  %v305_v56 = vld [vmem:[%s2915_s16 + $0x80] sm:$0xff]  ;;  %v306_v58 = vld [vmem:[%s2915_s16 + $0x88] sm:$0xff] }
  0x6c   : > { %2240 = vmatprep.subr.bf16.mxu0 %v2239_v16  ;;  %2259 = vmatprep.subr.bf16.mxu1 %v2239_v16  ;;  %v337_v57 = vld [vmem:[%s2915_s16 + $0x180] sm:$0xff]  ;;  %v338_v59 = vld [vmem:[%s2915_s16 + $0x188] sm:$0xff]  ;;  %v307_v60 = vld [vmem:[%s2915_s16 + $0x90] sm:$0xff] }
  0x6d   : > { %v339_v61 = vld [vmem:[%s2915_s16 + $0x190] sm:$0xff]  ;;  %v308_v62 = vld [vmem:[%s2915_s16 + $0x98] sm:$0xff]  ;;  %v309_v0 = vld [vmem:[%s2915_s16 + $0xa0] sm:$0xff] }
  0x6e   : > { %v340_v63 = vld [vmem:[%s2915_s16 + $0x198] sm:$0xff]  ;;  %v341_v1 = vld [vmem:[%s2915_s16 + $0x1a0] sm:$0xff]  ;;  %v310_v2 = vld [vmem:[%s2915_s16 + $0xa8] sm:$0xff] }
  0x6f   : > { %2242 = vmatpush3.bf16.msra.mxu0 %v2239_v16  ;;  %2267 = vmatpush3.bf16.msra.mxu1 %v2239_v16  ;;  %v342_v3 = vld [vmem:[%s2915_s16 + $0x1a8] sm:$0xff]  ;;  %v311_v4 = vld [vmem:[%s2915_s16 + $0xb0] sm:$0xff]  ;;  %v312_v6 = vld [vmem:[%s2915_s16 + $0xb8] sm:$0xff] }
  0x70   : > { %2244 = vmatprep.subr.bf16.mxu0 %v2243_v19  ;;  %2260 = vmatprep.subr.bf16.mxu1 %v2243_v19  ;;  %v343_v5 = vld [vmem:[%s2915_s16 + $0x1b0] sm:$0xff]  ;;  %v344_v7 = vld [vmem:[%s2915_s16 + $0x1b8] sm:$0xff]  ;;  %v313_v8 = vld [vmem:[%s2915_s16 + $0xc0] sm:$0xff] }
  0x71   : > { %v345_v9 = vld [vmem:[%s2915_s16 + $0x1c0] sm:$0xff]  ;;  %v314_v10 = vld [vmem:[%s2915_s16 + $0xc8] sm:$0xff]  ;;  %v347_v12 = vld [vmem:[%s2915_s16 + $0x1d0] sm:$0xff] }
  0x72   : > { %v346_v11 = vld [vmem:[%s2915_s16 + $0x1c8] sm:$0xff]  ;;  %v315_v13 = vld [vmem:[%s2915_s16 + $0xd0] sm:$0xff]  ;;  %v348_v14 = vld [vmem:[%s2915_s16 + $0x1d8] sm:$0xff] }
  0x73   : > { %2246 = vmatpush3.bf16.msra.mxu0 %v2243_v19  ;;  %2268 = vmatpush3.bf16.msra.mxu1 %v2243_v19  ;;  %v316_v15 = vld [vmem:[%s2915_s16 + $0xd8] sm:$0xff]  ;;  %v317_v16 = vld [vmem:[%s2915_s16 + $0xe0] sm:$0xff]  ;;  %v318_v18 = vld [vmem:[%s2915_s16 + $0xe8] sm:$0xff] }
  0x74   : > { %2248 = vmatprep.subr.bf16.mxu0 %v2247_v22  ;;  %2261 = vmatprep.subr.bf16.mxu1 %v2247_v22  ;;  %v349_v17 = vld [vmem:[%s2915_s16 + $0x1e0] sm:$0xff]  ;;  %v350_v19 = vld [vmem:[%s2915_s16 + $0x1e8] sm:$0xff]  ;;  %v319_v20 = vld [vmem:[%s2915_s16 + $0xf0] sm:$0xff] }
  0x75   : > { %v351_v21 = vld [vmem:[%s2915_s16 + $0x1f0] sm:$0xff]  ;;  %v352_v23 = vld [vmem:[%s2915_s16 + $0x1f8] sm:$0xff]  ;;  %v2992_v24 = vld [vmem:[%s3757_s2] ss:$0 sm:$0xff] }
  0x77   : > { %2250 = vmatpush3.bf16.msra.mxu0 %v2247_v22  ;;  %2269 = vmatpush3.bf16.msra.mxu1 %v2247_v22  ;;  %v320_v22 = vld [vmem:[%s2915_s16 + $0xf8] sm:$0xff]  ;;  %s2651_s16 = sshll.u32 %s2724_s15, 4  ;;  %s2652_s16 = int_to_ptr.vmem [resolvable:$false] %s2651_s16 }
  0x78   : > { %2252 = vmatprep.subr.bf16.mxu0 %v2251_v25  ;;  %2262 = vmatprep.subr.bf16.mxu1 %v2251_v25  ;;  %s2653_s29 = scalar_lea.vmem %s2652_s16, 256  ;;  %p2654_p10 = scmp.lt.s32.totalorder %s3713_s10, %s2652_s16 }
  0x79   : > { %p2655_p13 = scmp.lt.s32.totalorder %s2653_s29, %s2647_s5 }
  0x7b   : > { %2254 = vmatpush3.bf16.msra.mxu0 %v2251_v25  ;;  %2270 = vmatpush3.bf16.msra.mxu1 %v2251_v25  ;;  %p2656_p3 = por %p2655_p13, %p2654_p10 }
  0x7d   : > { %p2657_p7 = pnand %p2656_p3, %p2650_p8 }
  0x7e   : > { %2128 = vmatmul.mubr.f32.vlgmr.msra.gmra.mrb[0].mxu0 %v290_v26  ;;  %2176 = vmatmul.mubr.f32.vlgmr.msra.gmra.mrb[0].mxu1 %v322_v27 }
  0x7f   : > { %2130 = vmatprep.mubr.f32.mxu0 %v291_v28  ;;  %2178 = vmatprep.mubr.f32.mxu1 %v323_v29 }
  0x82   : > { %2131 = vmatmul.mubr.f32.gmra.mrb[2].mxu0 %v292_v30  ;;  %2179 = vmatmul.mubr.f32.gmra.mrb[2].mxu1 %v324_v31 }
  0x83   : > { %2181 = vmatprep.mubr.f32.mxu1 %v325_v32  ;;  %2133 = vmatprep.mubr.f32.mxu0 %v293_v33  ;;  %v3011_v32 = vld [vmem:[%s3758_s3] ss:$0 sm:$0xff] }
  0x86   : > { %2182 = vmatmul.mubr.f32.gmra.mrb[4].mxu1 %v326_v34  ;;  %2134 = vmatmul.mubr.f32.gmra.mrb[4].mxu0 %v294_v35 }
  0x87   : > { %2184 = vmatprep.mubr.f32.mxu1 %v327_v36  ;;  %2136 = vmatprep.mubr.f32.mxu0 %v295_v37 }
  0x8a   : > { %2185 = vmatmul.mubr.f32.gmra.mrb[6].mxu1 %v328_v38  ;;  %2137 = vmatmul.mubr.f32.gmra.mrb[6].mxu0 %v296_v39 }
  0x8b   : > { %2187 = vmatprep.mubr.f32.mxu1 %v329_v40  ;;  %2139 = vmatprep.mubr.f32.mxu0 %v297_v41 }
  0x8e   : > { %2188 = vmatmul.mubr.f32.gmra.mrb[8].mxu1 %v330_v42  ;;  %2140 = vmatmul.mubr.f32.gmra.mrb[8].mxu0 %v298_v43 }
  0x8f   : > { %2142 = vmatprep.mubr.f32.mxu0 %v299_v44  ;;  %2190 = vmatprep.mubr.f32.mxu1 %v331_v45 }
  0x92   : > { %2143 = vmatmul.mubr.f32.gmra.mrb[10].mxu0 %v300_v46  ;;  %2191 = vmatmul.mubr.f32.gmra.mrb[10].mxu1 %v332_v47 }
  0x93   : > { %2145 = vmatprep.mubr.f32.mxu0 %v301_v48  ;;  %2193 = vmatprep.mubr.f32.mxu1 %v333_v49 }
  0x96   : > { %2146 = vmatmul.mubr.f32.gmra.mrb[12].mxu0 %v302_v50  ;;  %2194 = vmatmul.mubr.f32.gmra.mrb[12].mxu1 %v334_v51 }
  0x97   : > { %2148 = vmatprep.mubr.f32.mxu0 %v303_v52  ;;  %2196 = vmatprep.mubr.f32.mxu1 %v335_v53 }
  0x9a   : > { %2149 = vmatmul.mubr.f32.gmra.mrb[14].mxu0 %v304_v54  ;;  %2197 = vmatmul.mubr.f32.gmra.mrb[14].mxu1 %v336_v55 }
  0x9b   : > { %2151 = vmatprep.mubr.f32.mxu0 %v305_v56  ;;  %2199 = vmatprep.mubr.f32.mxu1 %v337_v57 }
  0x9e   : > { %2152 = vmatmul.mubr.f32.gmra.mrb[16].mxu0 %v306_v58  ;;  %2200 = vmatmul.mubr.f32.gmra.mrb[16].mxu1 %v338_v59 }
  0x9f   : > { %2154 = vmatprep.mubr.f32.mxu0 %v307_v60  ;;  %2202 = vmatprep.mubr.f32.mxu1 %v339_v61 }
  0xa2   : > { %2155 = vmatmul.mubr.f32.gmra.mrb[18].mxu0 %v308_v62  ;;  %2203 = vmatmul.mubr.f32.gmra.mrb[18].mxu1 %v340_v63 }
  0xa3   : > { %2157 = vmatprep.mubr.f32.mxu0 %v309_v0  ;;  %2205 = vmatprep.mubr.f32.mxu1 %v341_v1 }
  0xa6   : > { %2158 = vmatmul.mubr.f32.gmra.mrb[20].mxu0 %v310_v2  ;;  %2206 = vmatmul.mubr.f32.gmra.mrb[20].mxu1 %v342_v3 }
  0xa7   : > { %2160 = vmatprep.mubr.f32.mxu0 %v311_v4  ;;  %2208 = vmatprep.mubr.f32.mxu1 %v343_v5 }
  0xaa   : > { %2161 = vmatmul.mubr.f32.gmra.mrb[22].mxu0 %v312_v6  ;;  %2209 = vmatmul.mubr.f32.gmra.mrb[22].mxu1 %v344_v7 }
  0xab   : > { %2163 = vmatprep.mubr.f32.mxu0 %v313_v8  ;;  %2211 = vmatprep.mubr.f32.mxu1 %v345_v9 }
  0xae   : > { %2164 = vmatmul.mubr.f32.gmra.mrb[24].mxu0 %v314_v10  ;;  %2212 = vmatmul.mubr.f32.gmra.mrb[24].mxu1 %v346_v11 }
  0xaf   : > { %2214 = vmatprep.mubr.f32.mxu1 %v347_v12  ;;  %2166 = vmatprep.mubr.f32.mxu0 %v315_v13 }
  0xb2   : > { %2215 = vmatmul.mubr.f32.gmra.mrb[26].mxu1 %v348_v14  ;;  %2167 = vmatmul.mubr.f32.gmra.mrb[26].mxu0 %v316_v15 }
  0xb3   : > { %2169 = vmatprep.mubr.f32.mxu0 %v317_v16  ;;  %2217 = vmatprep.mubr.f32.mxu1 %v349_v17 }
  0xb6   : > { %2170 = vmatmul.mubr.f32.gmra.mrb[28].mxu0 %v318_v18  ;;  %2218 = vmatmul.mubr.f32.gmra.mrb[28].mxu1 %v350_v19 }
  0xb7   : > { %2172 = vmatprep.mubr.f32.mxu0 %v319_v20  ;;  %2220 = vmatprep.mubr.f32.mxu1 %v351_v21 }
  0xba   : > { %2173 = vmatmul.mubr.f32.gmra.mrb[30].mxu0 %v320_v22  ;;  %2221 = vmatmul.mubr.f32.gmra.mrb[30].mxu1 %v352_v23 }
 0x151   : > { %v2994_v25 = vpop.f32.mrb[0].mxu0  ;;  %v2996_v26 = vpop.f32.mrb[0].mxu1 }
 0x152   : > { %v762_v27 = vadd.f32 %v2994_v25, %v2992_v24  ;;  %v794_v28 = vadd.f32 %v2996_v26, %v2992_v24  ;;  %v3002_v29 = vpop.f32.mrb[1].mxu0  ;;  %v3004_v30 = vpop.f32.mrb[1].mxu1 }
 0x153   : > { %v793_v31 = vadd.f32 %v2992_v24, %v3004_v30  ;;  %v761_v38 = vadd.f32 %v2992_v24, %v3002_v29 }
 0x154   : > { %v858_v33 = vmax.f32 %v794_v28, 0.0  ;;  %v826_v34 = vmax.f32 %v762_v27, 0.0 }
 0x155   : > { %v3013_v35 = vpop.f32.mrb[2].mxu0  ;;  %v3015_v36 = vpop.f32.mrb[2].mxu1  ;;  %v857_v37 = vmax.f32 %v793_v31, 0.0  ;;  %v825_v49 = vmax.f32 %v761_v38, 0.0 }
 0x156   : > { %v764_v39 = vadd.f32 %v3013_v35, %v2992_v24  ;;  %v3021_v40 = vpop.f32.mrb[3].mxu1  ;;  %v897_v41 = vmul.f32 %v3011_v32, %v826_v34  ;;  %v3024_v42 = vpop.f32.mrb[3].mxu0  ;;  %v796_v43 = vadd.f32 %v3015_v36, %v2992_v24  ;;  %v929_v46 = vmul.f32 %v3011_v32, %v858_v33 }
 0x157   : > { %v928_v44 = vmul.f32 %v3011_v32, %v857_v37  ;;  %v763_v50 = vadd.f32 %v2992_v24, %v3024_v42  ;;  %v795_v55 = vadd.f32 %v2992_v24, %v3021_v40  ;;  %v896_v62 = vmul.f32 %v3011_v32, %v825_v49 }
 0x158   : > { %v828_v45 = vmax.f32 %v764_v39, 0.0  ;;  %962 = vadd.xlane.f32.xlu0 %v897_v41  ;;  %v860_v54 = vmax.f32 %v796_v43, 0.0 }
 0x159   : > { %1024 = vadd.xlane.f32.xlu1 %v928_v44  ;;  %v3030_v47 = vpop.f32.mrb[4].mxu1  ;;  %v3032_v48 = vpop.f32.mrb[4].mxu0  ;;  %v827_v58 = vmax.f32 %v763_v50, 0.0  ;;  %v859_v0 = vmax.f32 %v795_v55, 0.0 }
 0x15a   : > { %v3036_v51 = vpop.f32.mrb[5].mxu1  ;;  %v899_v52 = vmul.f32 %v3011_v32, %v828_v45  ;;  %v3039_v53 = vpop.f32.mrb[5].mxu0  ;;  %v766_v1 = vadd.f32 %v3032_v48, %v2992_v24  ;;  %v931_v2 = vmul.f32 %v3011_v32, %v860_v54  ;;  %v798_v11 = vadd.f32 %v3030_v47, %v2992_v24 }
 0x15b   : > { %v765_v59 = vadd.f32 %v2992_v24, %v3039_v53  ;;  %v898_v8 = vmul.f32 %v3011_v32, %v827_v58  ;;  %v930_v14 = vmul.f32 %v3011_v32, %v859_v0  ;;  %v797_v18 = vadd.f32 %v2992_v24, %v3036_v51 }
 0x15c   : > { %1026 = vadd.xlane.f32.xlu0 %v929_v46  ;;  %v830_v12 = vmax.f32 %v766_v1, 0.0  ;;  %v862_v23 = vmax.f32 %v798_v11, 0.0 }
 0x15d   : > { %966 = vadd.xlane.f32.xlu1 %v899_v52  ;;  %v3043_v56 = vpop.f32.mrb[6].mxu1  ;;  %v3045_v57 = vpop.f32.mrb[6].mxu0  ;;  %v829_v6 = vmax.f32 %v765_v59, 0.0  ;;  %v861_v38 = vmax.f32 %v797_v18, 0.0 }
 0x15e   : > { %3824 = vst [vmem:[#allocation13_spill] sm:$0xff] %v3043_v56  ;;  %3825 = vst [vmem:[#allocation14_spill] sm:$0xff] %v3045_v57  ;;  %v800_v60 = vadd.f32 %v3043_v56, %v2992_v24  ;;  %v3051_v61 = vpop.f32.mrb[7].mxu1  ;;  %v3054_v63 = vpop.f32.mrb[7].mxu0  ;;  %v901_v27 = vmul.f32 %v3011_v32, %v830_v12  ;;  %v768_v44 = vadd.f32 %v3045_v57, %v2992_v24 }
 0x15f   : > { %3826 = vst [vmem:[#allocation15_spill] sm:$0xff] %v3051_v61  ;;  %3827 = vst [vmem:[#allocation16_spill] sm:$0xff] %v3054_v63  ;;  %v900_v19 = vmul.f32 %v3011_v32, %v829_v6  ;;  %v799_v43 = vadd.f32 %v2992_v24, %v3051_v61  ;;  %v767_v45 = vadd.f32 %v2992_v24, %v3054_v63 }
 0x160   : > { %v864_v3 = vmax.f32 %v800_v60, 0.0  ;;  %960 = vadd.xlane.f32.xlu0 %v896_v62  ;;  %v933_v46 = vmul.f32 %v3011_v32, %v862_v23  ;;  %v932_v6 = vmul.f32 %v3011_v32, %v861_v38 }
 0x161   : > { %1030 = vadd.xlane.f32.xlu1 %v931_v2  ;;  %v3059_v4 = vpop.f32.mrb[8].mxu1  ;;  %v3061_v5 = vpop.f32.mrb[8].mxu0  ;;  %v863_v1 = vmax.f32 %v799_v43, 0.0  ;;  %v832_v2 = vmax.f32 %v768_v44, 0.0 }
 0x162   : > { %3828 = vst [vmem:[#allocation17_spill] sm:$0xff] %v3059_v4  ;;  %3829 = vst [vmem:[#allocation18_spill] sm:$0xff] %v3061_v5  ;;  %v3063_v7 = vpop.f32.mrb[9].mxu1  ;;  %v3066_v9 = vpop.f32.mrb[9].mxu0  ;;  %v3069_v10 = vmul.f32 %v3011_v32, %v864_v3  ;;  %v802_v54 = vadd.f32 %v3059_v4, %v2992_v24  ;;  %v770_v55 = vadd.f32 %v3061_v5, %v2992_v24  ;;  %v831_v3 = vmax.f32 %v767_v45, 0.0 }
 0x163   : > { %3830 = vst [vmem:[#allocation19_spill] sm:$0xff] %v3066_v9  ;;  %v801_v13 = vadd.f32 %v2992_v24, %v3063_v7  ;;  %v769_v18 = vadd.f32 %v2992_v24, %v3066_v9  ;;  %v903_v38 = vmul.f32 %v3011_v32, %v832_v2  ;;  %v934_v44 = vmul.f32 %v3011_v32, %v863_v1 }
 0x164   : > { %964 = vadd.xlane.f32.xlu0 %v898_v8  ;;  %v902_v43 = vmul.f32 %v3011_v32, %v831_v3 }
 0x165   : > { %v865_v15 = vmax.f32 %v801_v13, 0.0  ;;  %1028 = vadd.xlane.f32.xlu1 %v930_v14  ;;  %v3076_v16 = vpop.f32.mrb[10].mxu0  ;;  %v3078_v17 = vpop.f32.mrb[10].mxu1  ;;  %v866_v14 = vmax.f32 %v802_v54, 0.0 }
 0x166   : > { %v772_v20 = vadd.f32 %v3076_v16, %v2992_v24  ;;  %v3085_v21 = vpop.f32.mrb[11].mxu0  ;;  %v3087_v22 = vpop.f32.mrb[11].mxu1  ;;  %v804_v31 = vadd.f32 %v3078_v17, %v2992_v24 }
 0x167   : > { %3831 = vst [vmem:[#allocation20_spill] sm:$0xff] %v3085_v21  ;;  %3832 = vst [vmem:[#allocation21_spill] sm:$0xff] %v3087_v22  ;;  %v936_v33 = vmul.f32 %v3011_v32, %v865_v15  ;;  %v834_v15 = vmax.f32 %v770_v55, 0.0 }
 0x168   : > { %968 = vadd.xlane.f32.xlu0 %v900_v19  ;;  %v836_v28 = vmax.f32 %v772_v20, 0.0  ;;  %v868_v49 = vmax.f32 %v804_v31, 0.0 }
 0x169   : > { %970 = vadd.xlane.f32.xlu1 %v901_v27  ;;  %v3093_v34 = vpop.f32.mrb[12].mxu0  ;;  %v3095_v37 = vpop.f32.mrb[12].mxu1  ;;  %v3153_v55 = vmul.f32 %v3011_v32, %v834_v15  ;;  %v3182_v15 = vadd.f32 %v2992_v24, %v3087_v22 }
 0x16a   : > { %3833 = vst [vmem:[#allocation22_spill] sm:$0xff] %v3093_v34  ;;  %3834 = vst [vmem:[#allocation23_spill] sm:$0xff] %v3095_v37  ;;  %v3097_v39 = vpop.f32.mrb[13].mxu0  ;;  %v3099_v41 = vpop.f32.mrb[13].mxu1  ;;  %v907_v50 = vmul.f32 %v3011_v32, %v836_v28  ;;  %v774_v52 = vadd.f32 %v3093_v34, %v2992_v24  ;;  %v806_v11 = vadd.f32 %v3095_v37, %v2992_v24 }
 0x16b   : > { %3835 = vst [vmem:[#allocation24_spill] sm:$0xff] %v3097_v39  ;;  %3836 = vst [vmem:[#allocation25_spill] sm:$0xff] %v3099_v41  ;;  %v939_v12 = vmul.f32 %v3011_v32, %v868_v49  ;;  %v805_v54 = vadd.f32 %v2992_v24, %v3099_v41  ;;  %v773_v5 = vadd.f32 %v2992_v24, %v3097_v39 }
 0x16c   : > { %1040 = vadd.xlane.f32.xlu0 %v936_v33  ;;  %v838_v8 = vmax.f32 %v774_v52, 0.0  ;;  %v870_v45 = vmax.f32 %v806_v11, 0.0  ;;  %v833_v52 = vmax.f32 %v769_v18, 0.0 }
 0x16d   : > { %1034 = vadd.xlane.f32.xlu1 %v933_v46  ;;  %v3115_v58 = vpop.f32.mrb[14].mxu0  ;;  %v3117_v59 = vpop.f32.mrb[14].mxu1  ;;  %v837_v37 = vmax.f32 %v773_v5, 0.0 }
 0x16e   : > { %3837 = vst [vmem:[#allocation26_spill] sm:$0xff] %v3115_v58  ;;  %3838 = vst [vmem:[#allocation27_spill] sm:$0xff] %v3117_v59  ;;  %v3119_v60 = vpop.f32.mrb[15].mxu0  ;;  %v808_v62 = vadd.f32 %v3117_v59, %v2992_v24  ;;  %v3123_v0 = vpop.f32.mrb[15].mxu1  ;;  %v909_v46 = vmul.f32 %v3011_v32, %v838_v8  ;;  %v869_v59 = vmax.f32 %v805_v54, 0.0  ;;  %v3192_v56 = vmul.f32 %v3011_v32, %v833_v52 }
 0x16f   : > { %3839 = vst [vmem:[#allocation28_spill] sm:$0xff] %v3119_v60  ;;  %3840 = vst [vmem:[#allocation29_spill] sm:$0xff] %v3123_v0 }
 0x170   : > { %982 = vadd.xlane.f32.xlu0 %v907_v50  ;;  %v872_v13 = vmax.f32 %v808_v62, 0.0  ;;  %v3156_v62 = vmul.f32 %v3011_v32, %v866_v14  ;;  %v3178_v14 = vadd.f32 %v2992_v24, %v3085_v21 }
 0x171   : > { %1032 = vadd.xlane.f32.xlu1 %v932_v6  ;;  %v3131_v19 = vpop.f32.mrb[16].mxu0  ;;  %v3133_v20 = vpop.f32.mrb[16].mxu1 }
 0x172   : > { %3841 = vst [vmem:[#allocation30_spill] sm:$0xff] %v3131_v19  ;;  %3842 = vst [vmem:[#allocation31_spill] sm:$0xff] %v3133_v20  ;;  %v778_v23 = vadd.f32 %v3131_v19, %v2992_v24  ;;  %v3137_v27 = vpop.f32.mrb[17].mxu0  ;;  %v810_v28 = vadd.f32 %v3133_v20, %v2992_v24  ;;  %v3141_v31 = vpop.f32.mrb[17].mxu1  ;;  %v3144_v33 = vmul.f32 %v3011_v32, %v872_v13 }
 0x173   : > { %3843 = vst [vmem:[#allocation32_spill] sm:$0xff] %v3137_v27  ;;  %3844 = vst [vmem:[#allocation33_spill] sm:$0xff] %v3141_v31 }
 0x174   : > { %1046 = vadd.xlane.f32.xlu0 %v939_v12  ;;  %v842_v49 = vmax.f32 %v778_v23, 0.0  ;;  %v874_v50 = vmax.f32 %v810_v28, 0.0  ;;  %v941_v28 = vmul.f32 %v3011_v32, %v870_v45 }
 0x175   : > { %974 = vadd.xlane.f32.xlu1 %v903_v38  ;;  %v3158_v2 = vpop.f32.mrb[18].mxu0  ;;  %v3160_v1 = vpop.f32.mrb[18].mxu1  ;;  %v776_v38 = vadd.f32 %v3115_v58, %v2992_v24 }
 0x176   : > { %3845 = vst [vmem:[#allocation34_spill] sm:$0xff] %v3158_v2  ;;  %3846 = vst [vmem:[#allocation35_spill] sm:$0xff] %v3160_v1  ;;  %v780_v3 = vadd.f32 %v3158_v2, %v2992_v24  ;;  %v3164_v6 = vpop.f32.mrb[19].mxu0  ;;  %v812_v8 = vadd.f32 %v3160_v1, %v2992_v24  ;;  %v3168_v11 = vpop.f32.mrb[19].mxu1  ;;  %v3171_v12 = vmul.f32 %v3011_v32, %v842_v49 }
 0x177   : > { %3847 = vst [vmem:[#allocation36_spill] sm:$0xff] %v3164_v6  ;;  %3848 = vst [vmem:[#allocation37_spill] sm:$0xff] %v3168_v11  ;;  %v3174_v13 = vmul.f32 %v3011_v32, %v874_v50  ;;  %v779_v18 = vadd.f32 %v2992_v24, %v3164_v6  ;;  %v811_v23 = vadd.f32 %v2992_v24, %v3168_v11 }
 0x178   : > { %986 = vadd.xlane.f32.xlu0 %v909_v46  ;;  %v844_v49 = vmax.f32 %v780_v3, 0.0  ;;  %v876_v50 = vmax.f32 %v812_v8, 0.0 }
 0x179   : > { %972 = vadd.xlane.f32.xlu1 %v902_v43  ;;  %v843_v1 = vmax.f32 %v779_v18, 0.0  ;;  %v875_v2 = vmax.f32 %v811_v23, 0.0  ;;  %v3194_v20 = vpop.f32.mrb[20].mxu0  ;;  %v3196_v6 = vpop.f32.mrb[20].mxu1 }
 0x17a   : > { %3849 = vst [vmem:[#allocation38_spill] sm:$0xff] %v3194_v20  ;;  %3850 = vst [vmem:[#allocation39_spill] sm:$0xff] %v3196_v6  ;;  %v782_v46 = vadd.f32 %v3194_v20, %v2992_v24  ;;  %v3200_v45 = vpop.f32.mrb[21].mxu0  ;;  %v3203_v11 = vmul.f32 %v3011_v32, %v844_v49  ;;  %v814_v43 = vadd.f32 %v3196_v6, %v2992_v24  ;;  %v3207_v54 = vpop.f32.mrb[21].mxu1  ;;  %v840_v6 = vmax.f32 %v776_v38, 0.0 }
 0x17b   : > { %3851 = vst [vmem:[#allocation40_spill] sm:$0xff] %v3200_v45  ;;  %3852 = vst [vmem:[#allocation41_spill] sm:$0xff] %v3207_v54  ;;  %v3210_v52 = vmul.f32 %v3011_v32, %v876_v50  ;;  %v781_v3 = vadd.f32 %v2992_v24, %v3200_v45  ;;  %v813_v8 = vadd.f32 %v2992_v24, %v3207_v54 }
 0x17c   : > { %v3217_v18 = vmul.f32 %v3011_v32, %v843_v1  ;;  %v3220_v23 = vmul.f32 %v3011_v32, %v875_v2  ;;  %1050 = vadd.xlane.f32.xlu0 %v941_v28  ;;  %v846_v20 = vmax.f32 %v782_v46, 0.0  ;;  %v878_v19 = vmax.f32 %v814_v43, 0.0 }
 0x17d   : > { %1036 = vadd.xlane.f32.xlu1 %v934_v44  ;;  %v775_v50 = vadd.f32 %v2992_v24, %v3119_v60  ;;  %v940_v45 = vmul.f32 %v3011_v32, %v869_v59  ;;  %v845_v22 = vmax.f32 %v781_v3, 0.0  ;;  %v3226_v54 = vpop.f32.mrb[22].mxu0  ;;  %v877_v1 = vmax.f32 %v813_v8, 0.0  ;;  %v3228_v21 = vpop.f32.mrb[22].mxu1 }
 0x17e   : > { %3853 = vst [vmem:[#allocation42_spill] sm:$0xff] %v3226_v54  ;;  %3854 = vst [vmem:[#allocation43_spill] sm:$0xff] %v3228_v21  ;;  %v784_v2 = vadd.f32 %v3226_v54, %v2992_v24  ;;  %v3232_v49 = vpop.f32.mrb[23].mxu0  ;;  %v816_v28 = vadd.f32 %v3228_v21, %v2992_v24  ;;  %v3236_v44 = vpop.f32.mrb[23].mxu1  ;;  %v3239_v38 = vmul.f32 %v3011_v32, %v846_v20 }
 0x17f   : > { %3855 = vst [vmem:[#allocation44_spill] sm:$0xff] %v3232_v49  ;;  %3856 = vst [vmem:[#allocation45_spill] sm:$0xff] %v3236_v44  ;;  %v3242_v59 = vmul.f32 %v3011_v32, %v878_v19  ;;  %v783_v46 = vadd.f32 %v2992_v24, %v3232_v49  ;;  %v815_v43 = vadd.f32 %v2992_v24, %v3236_v44  ;;  %v839_v49 = vmax.f32 %v775_v50, 0.0 }
 0x180   : > { %v3249_v3 = vmul.f32 %v3011_v32, %v845_v22  ;;  %v3252_v8 = vmul.f32 %v3011_v32, %v877_v1  ;;  %1048 = vadd.xlane.f32.xlu0 %v940_v45  ;;  %v807_v20 = vadd.f32 %v2992_v24, %v3123_v0  ;;  %v911_v21 = vmul.f32 %v3011_v32, %v840_v6 }
 0x181   : > { %v848_v19 = vmax.f32 %v784_v2, 0.0  ;;  %v880_v54 = vmax.f32 %v816_v28, 0.0  ;;  %978 = vadd.xlane.f32.xlu1 %v3153_v55  ;;  %v847_v44 = vmax.f32 %v783_v46, 0.0  ;;  %v3259_v9 = vpop.f32.mrb[24].mxu0  ;;  %v879_v22 = vmax.f32 %v815_v43, 0.0  ;;  %v3261_v60 = vpop.f32.mrb[24].mxu1 }
 0x182   : > { %3857 = vst [vmem:[#allocation46_spill] sm:$0xff] %v3259_v9  ;;  %3858 = vst [vmem:[#allocation47_spill] sm:$0xff] %v3261_v60  ;;  %v786_v45 = vadd.f32 %v3259_v9, %v2992_v24  ;;  %v818_v1 = vadd.f32 %v3261_v60, %v2992_v24  ;;  %v3267_v6 = vpop.f32.mrb[25].mxu1  ;;  %v3269_v2 = vpop.f32.mrb[25].mxu0  ;;  %v871_v60 = vmax.f32 %v807_v20, 0.0 }
 0x183   : > { %3859 = vst [vmem:[#allocation48_spill] sm:$0xff] %v3267_v6  ;;  %3860 = vst [vmem:[#allocation49_spill] sm:$0xff] %v3269_v2  ;;  %v3272_v50 = vmul.f32 %v3011_v32, %v848_v19  ;;  %v3275_v55 = vmul.f32 %v3011_v32, %v880_v54  ;;  %v817_v28 = vadd.f32 %v2992_v24, %v3267_v6 }
 0x184   : > { %v785_v46 = vadd.f32 %v2992_v24, %v3269_v2  ;;  %v3282_v43 = vmul.f32 %v3011_v32, %v879_v22  ;;  %v3285_v58 = vmul.f32 %v3011_v32, %v847_v44  ;;  %990 = vadd.xlane.f32.xlu0 %v911_v21  ;;  %v777_v19 = vadd.f32 %v2992_v24, %v3137_v27 }
 0x185   : > { %v850_v9 = vmax.f32 %v786_v45, 0.0  ;;  %v882_v54 = vmax.f32 %v818_v1, 0.0  ;;  %1042 = vadd.xlane.f32.xlu1 %v3156_v62  ;;  %v910_v6 = vmul.f32 %v3011_v32, %v839_v49  ;;  %v809_v2 = vadd.f32 %v2992_v24, %v3141_v31  ;;  %v3293_v22 = vpop.f32.mrb[26].mxu1  ;;  %v3295_v44 = vpop.f32.mrb[26].mxu0 }
 0x186   : > { %v881_v0 = vmax.f32 %v817_v28, 0.0  ;;  %3861 = vst [vmem:[#allocation50_spill] sm:$0xff] %v3293_v22  ;;  %v849_v4 = vmax.f32 %v785_v46, 0.0  ;;  %3862 = vst [vmem:[#allocation51_spill] sm:$0xff] %v3295_v44  ;;  %v820_v62 = vadd.f32 %v3293_v22, %v2992_v24  ;;  %v788_v49 = vadd.f32 %v3295_v44, %v2992_v24  ;;  %v3307_v45 = vpop.f32.mrb[27].mxu0  ;;  %v3309_v1 = vpop.f32.mrb[27].mxu1 }
 0x187   : > { %v3298_v21 = vmul.f32 %v3011_v32, %v850_v9  ;;  %v3301_v20 = vmul.f32 %v3011_v32, %v882_v54  ;;  %3863 = vst [vmem:[#allocation52_spill] sm:$0xff] %v3307_v45  ;;  %3864 = vst [vmem:[#allocation53_spill] sm:$0xff] %v3309_v1  ;;  %v787_v28 = vadd.f32 %v2992_v24, %v3307_v45  ;;  %v841_v22 = vmax.f32 %v777_v19, 0.0 }
 0x188   : > { %v819_v9 = vadd.f32 %v2992_v24, %v3309_v1  ;;  %v3316_v46 = vmul.f32 %v3011_v32, %v849_v4  ;;  %v3319_v54 = vmul.f32 %v3011_v32, %v881_v0  ;;  %988 = vadd.xlane.f32.xlu0 %v910_v6  ;;  %v942_v44 = vmul.f32 %v3011_v32, %v871_v60 }
 0x189   : > { %v884_v31 = vmax.f32 %v820_v62, 0.0  ;;  %v852_v27 = vmax.f32 %v788_v49, 0.0  ;;  %976 = vadd.xlane.f32.xlu1 %v3192_v56  ;;  %v3865_v45 = vmax.f32 %v3178_v14, 0.0  ;;  %v851_v4 = vmax.f32 %v787_v28, 0.0  ;;  %v3328_v61 = vpop.f32.mrb[28].mxu0  ;;  %v3330_v0 = vpop.f32.mrb[28].mxu1 }
 0x18a   : > { %v883_v41 = vmax.f32 %v819_v9, 0.0  ;;  %3866 = vst [vmem:[#allocation54_spill] sm:$0xff] %v3328_v61  ;;  %3867 = vst [vmem:[#allocation55_spill] sm:$0xff] %v3330_v0  ;;  %v790_v60 = vadd.f32 %v3328_v61, %v2992_v24  ;;  %v822_v19 = vadd.f32 %v3330_v0, %v2992_v24  ;;  %v3337_v62 = vpop.f32.mrb[29].mxu0  ;;  %v3339_v56 = vpop.f32.mrb[29].mxu1  ;;  %v873_v9 = vmax.f32 %v809_v2, 0.0 }
 0x18b   : > { %v906_v1 = vmul.f32 %v3011_v32, %v3865_v45  ;;  %v955_v6 = vmul.f32 %v3011_v32, %v884_v31  ;;  %3868 = vst [vmem:[#allocation56_spill] sm:$0xff] %v3337_v62  ;;  %3869 = vst [vmem:[#allocation57_spill] sm:$0xff] %v3339_v56  ;;  %v3342_v14 = vmul.f32 %v3011_v32, %v852_v27  ;;  %v3870_v27 = vmax.f32 %v3182_v15, 0.0 }
 0x18c   : > { %v922_v49 = vmul.f32 %v3011_v32, %v851_v4  ;;  %v954_v45 = vmul.f32 %v3011_v32, %v883_v41  ;;  %v789_v31 = vadd.f32 %v2992_v24, %v3337_v62  ;;  %v821_v28 = vadd.f32 %v2992_v24, %v3339_v56  ;;  %1052 = vadd.xlane.f32.xlu0 %v942_v44 }
 0x18d   : > { %v912_v0 = vmul.f32 %v3011_v32, %v841_v22  ;;  %v854_v61 = vmax.f32 %v790_v60, 0.0  ;;  %v886_v39 = vmax.f32 %v822_v19, 0.0  ;;  %980 = vadd.xlane.f32.xlu1 %v906_v1  ;;  %v938_v4 = vmul.f32 %v3011_v32, %v3870_v27  ;;  %v3354_v63 = vpop.f32.mrb[30].mxu0  ;;  %v3356_v62 = vpop.f32.mrb[30].mxu1 }
 0x18e   : > { %v853_v57 = vmax.f32 %v789_v31, 0.0  ;;  %v885_v41 = vmax.f32 %v821_v28, 0.0  ;;  %3871 = vst [vmem:[#allocation58_spill] sm:$0xff] %v3354_v63  ;;  %3872 = vst [vmem:[#allocation59_spill] sm:$0xff] %v3356_v62  ;;  %v792_v22 = vadd.f32 %v3354_v63, %v2992_v24  ;;  %v3362_v44 = vpop.f32.mrb[31].mxu0  ;;  %v824_v5 = vadd.f32 %v3356_v62, %v2992_v24  ;;  %v3366_v15 = vpop.f32.mrb[31].mxu1 }
 0x18f   : > { %v925_v56 = vmul.f32 %v3011_v32, %v854_v61  ;;  %v957_v2 = vmul.f32 %v3011_v32, %v886_v39  ;;  %3873 = vst [vmem:[#allocation60_spill] sm:$0xff] %v3362_v44  ;;  %v791_v19 = vadd.f32 %v2992_v24, %v3362_v44  ;;  %v823_v61 = vadd.f32 %v2992_v24, %v3366_v15 }
 0x190   : > { %v924_v1 = vmul.f32 %v3011_v32, %v853_v57  ;;  %v956_v60 = vmul.f32 %v3011_v32, %v885_v41  ;;  %992 = vadd.xlane.f32.xlu0 %v912_v0  ;;  %v944_v39 = vmul.f32 %v3011_v32, %v873_v9  ;;  %v856_v31 = vmax.f32 %v792_v22, 0.0 }
 0x191   : > { %v888_v28 = vmax.f32 %v824_v5, 0.0  ;;  %1044 = vadd.xlane.f32.xlu1 %v938_v4  ;;  %v855_v27 = vmax.f32 %v791_v19, 0.0  ;;  %v887_v62 = vmax.f32 %v823_v61, 0.0  ;;  %v908_v41 = vmul.f32 %v3011_v32, %v837_v37 }
 0x192   : > { %v927_v63 = vmul.f32 %v3011_v32, %v856_v31  ;;  %v2723_v24 = vmov 16  }
 0x193   : > { %v959_v57 = vmul.f32 %v3011_v32, %v888_v28  ;;  %v926_v34 = vmul.f32 %v3011_v32, %v855_v27  ;;  %v958_v44 = vmul.f32 %v3011_v32, %v887_v62  ;;  %2332 = vset.pattern.permute.xlu1 %v2723_v24  ;;  %2331 = vset.pattern.permute.xlu0 %v2723_v24  ;;  %v3401_v32 = vstv %s1088_s19 }
 0x194   : > { %1056 = vadd.xlane.f32.xlu0 %v944_v39 }
 0x195   : > { %984 = vadd.xlane.f32.xlu1 %v908_v41 }
 0x198   : > { %998 = vadd.xlane.f32.xlu0 %v3203_v11 }
 0x199   : > { %994 = vadd.xlane.f32.xlu1 %v3171_v12 }
 0x19c   : > { %1062 = vadd.xlane.f32.xlu0 %v3210_v52 }
 0x19d   : > { %1058 = vadd.xlane.f32.xlu1 %v3174_v13 }
 0x1a0   : > { %996 = vadd.xlane.f32.xlu0 %v3217_v18 }
 0x1a1   : > { %1010 = vadd.xlane.f32.xlu1 %v3298_v21 }
 0x1a4   : > { %1060 = vadd.xlane.f32.xlu0 %v3220_v23 }
 0x1a5   : > { %1074 = vadd.xlane.f32.xlu1 %v3301_v20 }
 0x1a8   : > { %1002 = vadd.xlane.f32.xlu0 %v3239_v38 }
 0x1a9   : > { %1068 = vadd.xlane.f32.xlu1 %v3282_v43 }
 0x1ac   : > { %1066 = vadd.xlane.f32.xlu0 %v3242_v59 }
 0x1ad   : > { %1078 = vadd.xlane.f32.xlu1 %v955_v6 }
 0x1b0   : > { %1000 = vadd.xlane.f32.xlu0 %v3249_v3 }
 0x1b1   : > { %1012 = vadd.xlane.f32.xlu1 %v922_v49 }
 0x1b4   : > { %1064 = vadd.xlane.f32.xlu0 %v3252_v8 }
 0x1b5   : > { %1076 = vadd.xlane.f32.xlu1 %v954_v45 }
 0x1b8   : > { %1006 = vadd.xlane.f32.xlu0 %v3272_v50 }
 0x1b9   : > { %1018 = vadd.xlane.f32.xlu1 %v925_v56 }
 0x1bc   : > { %1004 = vadd.xlane.f32.xlu0 %v3285_v58 }
 0x1bd   : > { %1082 = vadd.xlane.f32.xlu1 %v957_v2 }
 0x1c0   : > { %1008 = vadd.xlane.f32.xlu0 %v3316_v46 }
 0x1c1   : > { %1016 = vadd.xlane.f32.xlu1 %v924_v1 }
 0x1c4   : > { %1072 = vadd.xlane.f32.xlu0 %v3319_v54 }
 0x1c5   : > { %1080 = vadd.xlane.f32.xlu1 %v956_v60 }
 0x1c8   : > { %1014 = vadd.xlane.f32.xlu0 %v3342_v14 }
 0x1c9   : > { %1022 = vadd.xlane.f32.xlu1 %v927_v63 }
 0x1cc   : > { %1038 = vadd.xlane.f32.xlu0 %v3069_v10 }
 0x1cd   : > { %1020 = vadd.xlane.f32.xlu1 %v926_v34 }
 0x1d0   : > { %1054 = vadd.xlane.f32.xlu0 %v3144_v33 }
 0x1d1   : > { %1084 = vadd.xlane.f32.xlu1 %v958_v44 }
 0x1d4   : > { %1070 = vadd.xlane.f32.xlu0 %v3275_v55 }
 0x1d5   : > { %1086 = vadd.xlane.f32.xlu1 %v959_v57 }
 0x1e5   : > { %v963_v37 = vpop.xlane.xlu0 %962 }
 0x1e6   : > { %v1091_v58 = vadd.f32 %v3401_v32, %v963_v37  ;;  %v1025_v11 = vpop.xlane.xlu1 %1024 }
 0x1e7   : > { %v1122_v12 = vadd.f32 %v3401_v32, %v1025_v11 }
 0x1e8   : > { %v1946_v13 = vmul.f32 -1.442695, %v1091_v58 }
 0x1e9   : > { %v1977_v63 = vmul.f32 -1.442695, %v1122_v12  ;;  %v1027_v52 = vpop.xlane.xlu0 %1026 }
 0x1ea   : > { %2333 = vpow2.f32 %v1946_v13  ;;  %v1123_v10 = vadd.f32 %v3401_v32, %v1027_v52  ;;  %v967_v34 = vpop.xlane.xlu1 %966 }
 0x1eb   : > { %2335 = vpow2.f32 %v1977_v63  ;;  %v1093_v33 = vadd.f32 %v3401_v32, %v967_v34 }
 0x1ec   : > { %v1978_v18 = vmul.f32 -1.442695, %v1123_v10 }
 0x1ed   : > { %v1948_v23 = vmul.f32 -1.442695, %v1093_v33  ;;  %v961_v38 = vpop.xlane.xlu0 %960 }
 0x1ee   : > { %2337 = vpow2.f32 %v1978_v18  ;;  %v1090_v59 = vadd.f32 %v3401_v32, %v961_v38  ;;  %v1031_v3 = vpop.xlane.xlu1 %1030 }
 0x1ef   : > { %2339 = vpow2.f32 %v1948_v23  ;;  %v1125_v8 = vadd.f32 %v3401_v32, %v1031_v3 }
 0x1f0   : > { %v1945_v50 = vmul.f32 -1.442695, %v1090_v59 }
 0x1f1   : > { %v1980_v55 = vmul.f32 -1.442695, %v1125_v8  ;;  %v965_v43 = vpop.xlane.xlu0 %964 }
 0x1f2   : > { %2341 = vpow2.f32 %v1945_v50  ;;  %v1092_v21 = vadd.f32 %v3401_v32, %v965_v43  ;;  %v1029_v20 = vpop.xlane.xlu1 %1028 }
 0x1f3   : > { %2343 = vpow2.f32 %v1980_v55  ;;  %v1124_v46 = vadd.f32 %v3401_v32, %v1029_v20 }
 0x1f4   : > { %v2334_v54 = vpop.eup %2333  ;;  %v1947_v0 = vmul.f32 -1.442695, %v1092_v21 }
 0x1f5   : > { %v2336_v6 = vpop.eup %2335  ;;  %v1347_v62 = vadd.f32 1.0, %v2334_v54  ;;  %v1979_v56 = vmul.f32 -1.442695, %v1124_v46  ;;  %v969_v14 = vpop.xlane.xlu0 %968 }
 0x1f6   : > { %v1378_v49 = vadd.f32 1.0, %v2336_v6  ;;  %2345 = vpow2.f32 %v1947_v0  ;;  %v1094_v45 = vadd.f32 %v3401_v32, %v969_v14  ;;  %v971_v9 = vpop.xlane.xlu1 %970 }
 0x1f7   : > { %2347 = vrcp.f32 %v1347_v62  ;;  %v1095_v4 = vadd.f32 %v3401_v32, %v971_v9 }
 0x1f8   : > { %v2338_v2 = vpop.eup %2337  ;;  %2349 = vrcp.f32 %v1378_v49  ;;  %v1949_v22 = vmul.f32 -1.442695, %v1094_v45 }
 0x1f9   : > { %v2340_v44 = vpop.eup %2339  ;;  %v1379_v5 = vadd.f32 1.0, %v2338_v2  ;;  %2351 = vpow2.f32 %v1979_v56  ;;  %v1950_v1 = vmul.f32 -1.442695, %v1095_v4  ;;  %v1041_v60 = vpop.xlane.xlu0 %1040 }
 0x1fa   : > { %v1349_v19 = vadd.f32 1.0, %v2340_v44  ;;  %2353 = vpow2.f32 %v1949_v22  ;;  %v1130_v61 = vadd.f32 %v3401_v32, %v1041_v60  ;;  %v1035_v39 = vpop.xlane.xlu1 %1034 }
 0x1fb   : > { %2355 = vrcp.f32 %v1379_v5  ;;  %v1127_v31 = vadd.f32 %v3401_v32, %v1035_v39 }
 0x1fc   : > { %v2342_v28 = vpop.eup %2341  ;;  %2357 = vrcp.f32 %v1349_v19  ;;  %v1985_v27 = vmul.f32 -1.442695, %v1130_v61 }
 0x1fd   : > { %v2344_v57 = vpop.eup %2343  ;;  %v1346_v41 = vadd.f32 1.0, %v2342_v28  ;;  %2359 = vpow2.f32 %v1950_v1  ;;  %v1982_v24 = vmul.f32 -1.442695, %v1127_v31  ;;  %v983_v37 = vpop.xlane.xlu0 %982 }
 0x1fe   : > { %v1381_v58 = vadd.f32 1.0, %v2344_v57  ;;  %2361 = vpow2.f32 %v1985_v27  ;;  %v1101_v11 = vadd.f32 %v3401_v32, %v983_v37  ;;  %v1033_v12 = vpop.xlane.xlu1 %1032 }
 0x1ff   : > { %2363 = vrcp.f32 %v1346_v41  ;;  %v1126_v13 = vadd.f32 %v3401_v32, %v1033_v12 }
 0x200   : > { %v2346_v63 = vpop.eup %2345  ;;  %2365 = vrcp.f32 %v1381_v58  ;;  %v1956_v52 = vmul.f32 -1.442695, %v1101_v11 }
 0x201   : > { %v2348_v10 = vpop.eup %2347  ;;  %v1348_v34 = vadd.f32 1.0, %v2346_v63  ;;  %2367 = vpow2.f32 %v1982_v24  ;;  %v1981_v33 = vmul.f32 -1.442695, %v1126_v13  ;;  %v1047_v18 = vpop.xlane.xlu0 %1046 }
 0x202   : > { %v2350_v23 = vpop.eup %2349  ;;  %2369 = vpow2.f32 %v1956_v52  ;;  %v1133_v38 = vadd.f32 %v3401_v32, %v1047_v18  ;;  %v975_v59 = vpop.xlane.xlu1 %974  ;;  %v1539_v49 = vmul.f32 %v2348_v10, %v2994_v25 }
 0x203   : > { %v2352_v3 = vpop.eup %2351  ;;  %v1570_v8 = vmul.f32 %v2350_v23, %v3004_v30  ;;  %2371 = vrcp.f32 %v1348_v34  ;;  %v1097_v50 = vadd.f32 %v3401_v32, %v975_v59 }
 0x204   : > { %v2354_v55 = vpop.eup %2353  ;;  %v1380_v43 = vadd.f32 1.0, %v2352_v3  ;;  %2373 = vpow2.f32 %v1981_v33  ;;  %v1988_v21 = vmul.f32 -1.442695, %v1133_v38  ;;  %v1604_v27 = vsel %vm1602_vm0, %v1539_v49, 0.0 }
 0x205   : > { %v2356_v20 = vpop.eup %2355  ;;  %v1350_v46 = vadd.f32 1.0, %v2354_v55  ;;  %v1952_v54 = vmul.f32 -1.442695, %v1097_v50  ;;  %v987_v0 = vpop.xlane.xlu0 %986  ;;  %v1687_v45 = vsel %vm1602_vm0, %v1570_v8, 0.0 }
 0x206   : > { %v2358_v6 = vpop.eup %2357  ;;  %v1571_v62 = vmul.f32 %v2356_v20, %v2996_v26  ;;  %2375 = vrcp.f32 %v1380_v43  ;;  %v1103_v56 = vadd.f32 %v3401_v32, %v987_v0  ;;  %v973_v14 = vpop.xlane.xlu1 %972 }
 0x207   : > { %v2360_v30 = vpop.eup %2359  ;;  %2377 = vrcp.f32 %v1350_v46  ;;  %v1096_v9 = vadd.f32 %v3401_v32, %v973_v14  ;;  %v1541_v12 = vmul.f32 %v2358_v6, %v3013_v35 }
 0x208   : > { %v2362_v4 = vpop.eup %2361  ;;  %v1688_v2 = vsel %vm1602_vm0, %v1571_v62, 0.0  ;;  %v1351_v22 = vadd.f32 1.0, %v2360_v30  ;;  %2379 = vpow2.f32 %v1988_v21  ;;  %v1958_v44 = vmul.f32 -1.442695, %v1103_v56 }
 0x209   : > { %v2364_v5 = vpop.eup %2363  ;;  %v1689_v26 = vadd.f32 %v1688_v2, %v1687_v45  ;;  %v1386_v1 = vadd.f32 1.0, %v2362_v4  ;;  %2381 = vpow2.f32 %v1952_v54  ;;  %v1051_v60 = vpop.xlane.xlu0 %1050  ;;  %v1951_v25 = vmul.f32 -1.442695, %v1096_v9 }
 0x20a   : > { %v2366_v19 = vpop.eup %2365  ;;  %v1538_v61 = vmul.f32 %v2364_v5, %v3002_v29  ;;  %2383 = vrcp.f32 %v1351_v22  ;;  %v1135_v39 = vadd.f32 %v3401_v32, %v1051_v60  ;;  %v1037_v31 = vpop.xlane.xlu1 %1036  ;;  %v1608_v20 = vsel %vm1602_vm0, %v1541_v12, 0.0 }
 0x20b   : > { %v2368_v28 = vpop.eup %2367  ;;  %v1573_v57 = vmul.f32 %v2366_v19, %v3015_v36  ;;  %2385 = vrcp.f32 %v1386_v1  ;;  %v1128_v41 = vadd.f32 %v3401_v32, %v1037_v31 }
 0x20c   : > { %v2370_v24 = vpop.eup %2369  ;;  %v1603_v37 = vsel %vm1602_vm0, %v1538_v61, 0.0  ;;  %v1383_v58 = vadd.f32 1.0, %v2368_v28  ;;  %2387 = vpow2.f32 %v1958_v44  ;;  %v1990_v11 = vmul.f32 -1.442695, %v1135_v39 }
 0x20d   : > { %v2372_v29 = vpop.eup %2371  ;;  %v1605_v13 = vadd.f32 %v1604_v27, %v1603_v37  ;;  %v1357_v63 = vadd.f32 1.0, %v2370_v24  ;;  %2389 = vpow2.f32 %v1951_v25  ;;  %v1049_v52 = vpop.xlane.xlu0 %1048  ;;  %v1983_v36 = vmul.f32 -1.442695, %v1128_v41 }
 0x20e   : > { %v2374_v10 = vpop.eup %2373  ;;  %v1540_v34 = vmul.f32 %v2372_v29, %v3024_v42  ;;  %2391 = vrcp.f32 %v1383_v58  ;;  %v1134_v33 = vadd.f32 %v3401_v32, %v1049_v52  ;;  %v979_v18 = vpop.xlane.xlu1 %978  ;;  %v1692_v61 = vsel %vm1602_vm0, %v1573_v57, 0.0 }
 0x20f   : > { %2393 = vrcp.f32 %v1357_v63  ;;  %v1382_v23 = vadd.f32 1.0, %v2374_v10  ;;  %v1099_v38 = vadd.f32 %v3401_v32, %v979_v18 }
 0x210   : > { %v2376_v59 = vpop.eup %2375  ;;  %v1606_v3 = vsel %vm1602_vm0, %v1540_v34, 0.0  ;;  %2395 = vpow2.f32 %v1990_v11  ;;  %v1989_v35 = vmul.f32 -1.442695, %v1134_v33 }
 0x211   : > { %v2378_v8 = vpop.eup %2377  ;;  %v1607_v50 = vadd.f32 %v1606_v3, %v1605_v13  ;;  %v1572_v55 = vmul.f32 %v2376_v59, %v3021_v40  ;;  %2397 = vrcp.f32 %v1382_v23  ;;  %v1954_v42 = vmul.f32 -1.442695, %v1099_v38  ;;  %v991_v43 = vpop.xlane.xlu0 %990 }
 0x212   : > { %v2380_v21 = vpop.eup %2379  ;;  %v1542_v46 = vmul.f32 %v2378_v8, %v3039_v53  ;;  %2399 = vpow2.f32 %v1983_v36  ;;  %v1105_v54 = vadd.f32 %v3401_v32, %v991_v43  ;;  %v1043_v0 = vpop.xlane.xlu1 %1042 }
 0x213   : > { %v2382_v6 = vpop.eup %2381  ;;  %v1690_v62 = vsel %vm1602_vm0, %v1572_v55, 0.0  ;;  %v1389_v56 = vadd.f32 1.0, %v2380_v21  ;;  %2401 = vpow2.f32 %v1989_v35  ;;  %v1131_v14 = vadd.f32 %v3401_v32, %v1043_v0 }
 0x214   : > { %v2384_v40 = vpop.eup %2383  ;;  %v1691_v30 = vadd.f32 %v1690_v62, %v1689_v26  ;;  %v1610_v49 = vsel %vm1602_vm0, %v1542_v46, 0.0  ;;  %v1353_v45 = vadd.f32 1.0, %v2382_v6  ;;  %2403 = vpow2.f32 %v1954_v42 }
 0x215   : > { %v2386_v9 = vpop.eup %2385  ;;  %v1543_v53 = vmul.f32 %v2384_v40, %v3032_v48  ;;  %2405 = vrcp.f32 %v1389_v56  ;;  %v1960_v4 = vmul.f32 -1.442695, %v1105_v54  ;;  %v1986_v2 = vmul.f32 -1.442695, %v1131_v14  ;;  %v989_v22 = vpop.xlane.xlu0 %988 }
 0x216   : > { %v2388_v44 = vpop.eup %2387  ;;  %v3446_v5 = vmul.f32 %v2386_v9, %v3063_v7  ;;  %2407 = vrcp.f32 %v1353_v45  ;;  %v1104_v1 = vadd.f32 %v3401_v32, %v989_v22  ;;  %v977_v60 = vpop.xlane.xlu1 %976  ;;  %v1609_v26 = vadd.f32 %v1608_v20, %v1607_v50 }
 0x217   : > { %v2390_v19 = vpop.eup %2389  ;;  %v1359_v25 = vadd.f32 1.0, %v2388_v44  ;;  %2409 = vpow2.f32 %v1960_v4  ;;  %v1098_v48 = vadd.f32 %v3401_v32, %v977_v60  ;;  %v1612_v27 = vsel %vm1602_vm0, %v1543_v53, 0.0  ;;  %v3874_v4 = vld [vmem:[#allocation22_spill] sm:$0xff] }
 0x218   : > { %v2392_v39 = vpop.eup %2391  ;;  %v1352_v31 = vadd.f32 1.0, %v2390_v19  ;;  %2411 = vpow2.f32 %v1986_v2  ;;  %v1959_v28 = vmul.f32 -1.442695, %v1104_v1  ;;  %v1611_v58 = vadd.f32 %v1610_v49, %v1609_v26  ;;  %v3875_v1 = vld [vmem:[#allocation16_spill] sm:$0xff]  ;;  %v3876_v19 = vld [vmem:[#allocation14_spill] sm:$0xff] }
 0x219   : > { %v2394_v7 = vpop.eup %2393  ;;  %v1575_v41 = vmul.f32 %v2392_v39, %v3030_v47  ;;  %2413 = vrcp.f32 %v1359_v25  ;;  %v1953_v24 = vmul.f32 -1.442695, %v1098_v48  ;;  %v1053_v37 = vpop.xlane.xlu0 %1052  ;;  %v1693_v13 = vadd.f32 %v1692_v61, %v1691_v30 }
 0x21a   : > { %v2396_v11 = vpop.eup %2395  ;;  %v3454_v57 = vmul.f32 %v2394_v7, %v3076_v16  ;;  %2415 = vrcp.f32 %v1352_v31  ;;  %v1136_v29 = vadd.f32 %v3401_v32, %v1053_v37  ;;  %v981_v12 = vpop.xlane.xlu1 %980  ;;  %v3458_v34 = vadd.f32 %v1612_v27, %v1611_v58  ;;  %v3877_v58 = vld [vmem:[#allocation23_spill] sm:$0xff] }
 0x21b   : > { %v2398_v63 = vpop.eup %2397  ;;  %v1391_v52 = vadd.f32 1.0, %v2396_v11  ;;  %2417 = vpow2.f32 %v1959_v28  ;;  %v1100_v10 = vadd.f32 %v3401_v32, %v981_v12  ;;  %v1696_v54 = vsel %vm1602_vm0, %v1575_v41, 0.0 }
 0x21c   : > { %v2400_v47 = vpop.eup %2399  ;;  %v1574_v36 = vmul.f32 %v2398_v63, %v3036_v51  ;;  %2419 = vpow2.f32 %v1953_v24  ;;  %v1991_v33 = vmul.f32 -1.442695, %v1136_v29 }
 0x21d   : > { %v2402_v18 = vpop.eup %2401  ;;  %2421 = vrcp.f32 %v1391_v52  ;;  %v1384_v16 = vadd.f32 1.0, %v2400_v47  ;;  %v1955_v23 = vmul.f32 -1.442695, %v1100_v10  ;;  %v993_v38 = vpop.xlane.xlu0 %992 }
 0x21e   : > { %v2404_v59 = vpop.eup %2403  ;;  %v1694_v3 = vsel %vm1602_vm0, %v1574_v36, 0.0  ;;  %v1390_v35 = vadd.f32 1.0, %v2402_v18  ;;  %2423 = vpow2.f32 %v1991_v33  ;;  %v1106_v8 = vadd.f32 %v3401_v32, %v993_v38  ;;  %v1045_v50 = vpop.xlane.xlu1 %1044  ;;  %v3878_v38 = vld [vmem:[#allocation15_spill] sm:$0xff] }
 0x21f   : > { %v2406_v55 = vpop.eup %2405  ;;  %2425 = vrcp.f32 %v1384_v16  ;;  %v1355_v42 = vadd.f32 1.0, %v2404_v59  ;;  %v1132_v51 = vadd.f32 %v3401_v32, %v1045_v50  ;;  %v1695_v43 = vadd.f32 %v1694_v3, %v1693_v13  ;;  %v3879_v3 = vld [vmem:[#allocation25_spill] sm:$0xff]  ;;  %v3880_v50 = vld [vmem:[#allocation18_spill] sm:$0xff] }
 0x220   : > { %v2408_v21 = vpop.eup %2407  ;;  %v3465_v20 = vmul.f32 %v2406_v55, %v3078_v17  ;;  %2427 = vrcp.f32 %v1390_v35  ;;  %v1961_v46 = vmul.f32 -1.442695, %v1106_v8 }
 0x221   : > { %v2410_v0 = vpop.eup %2409  ;;  %2429 = vrcp.f32 %v1355_v42  ;;  %v1057_v6 = vpop.xlane.xlu0 %1056  ;;  %v3468_v62 = vadd.f32 %v1696_v54, %v1695_v43  ;;  %v1987_v40 = vmul.f32 -1.442695, %v1132_v51  ;;  %v1545_v61 = vmul.f32 %v2408_v21, %v3876_v19 }
 0x222   : > { %v2412_v56 = vpop.eup %2411  ;;  %v1361_v14 = vadd.f32 1.0, %v2410_v0  ;;  %2431 = vpow2.f32 %v1955_v23  ;;  %v1138_v30 = vadd.f32 %v3401_v32, %v1057_v6  ;;  %v985_v49 = vpop.xlane.xlu1 %984  ;;  %v1708_v21 = vsel %vm1602_vm0, %v3446_v5, 0.0 }
 0x223   : > { %v2414_v45 = vpop.eup %2413  ;;  %v1387_v9 = vadd.f32 1.0, %v2412_v56  ;;  %2433 = vpow2.f32 %v1961_v46  ;;  %v1102_v17 = vadd.f32 %v3401_v32, %v985_v49  ;;  %v1616_v47 = vsel %vm1602_vm0, %v1545_v61, 0.0 }
 0x224   : > { %v2416_v53 = vpop.eup %2415  ;;  %v3473_v2 = vmul.f32 %v2414_v45, %v3874_v4  ;;  %2435 = vrcp.f32 %v1361_v14  ;;  %v1993_v22 = vmul.f32 -1.442695, %v1138_v30 }
 0x225   : > { %v2418_v44 = vpop.eup %2417  ;;  %v1544_v60 = vmul.f32 %v2416_v53, %v3875_v1  ;;  %2437 = vrcp.f32 %v1387_v9  ;;  %v999_v26 = vpop.xlane.xlu0 %998  ;;  %v1957_v39 = vmul.f32 -1.442695, %v1102_v17  ;;  %v3881_v53 = vld [vmem:[#allocation17_spill] sm:$0xff] }
 0x226   : > { %v2420_v25 = vpop.eup %2419  ;;  %v1360_v48 = vadd.f32 1.0, %v2418_v44  ;;  %2439 = vpow2.f32 %v1987_v40  ;;  %v1109_v31 = vadd.f32 %v3401_v32, %v999_v26  ;;  %v995_v28 = vpop.xlane.xlu1 %994 }
 0x227   : > { %v2422_v27 = vpop.eup %2421  ;;  %v1354_v7 = vadd.f32 1.0, %v2420_v25  ;;  %2441 = vpow2.f32 %v1993_v22  ;;  %v1107_v41 = vadd.f32 %v3401_v32, %v995_v28  ;;  %v1614_v24 = vsel %vm1602_vm0, %v1544_v60, 0.0 }
 0x228   : > { %v2424_v37 = vpop.eup %2423  ;;  %v3481_v11 = vmul.f32 %v2422_v27, %v3877_v58  ;;  %2443 = vrcp.f32 %v1360_v48  ;;  %v1964_v29 = vmul.f32 -1.442695, %v1109_v31  ;;  %v1615_v12 = vadd.f32 %v1614_v24, %v3458_v34  ;;  %v3883_v58 = vld [vmem:[#allocation19_spill] sm:$0xff] }
 0x229   : > { %v2426_v13 = vpop.eup %2425  ;;  %2445 = vrcp.f32 %v1354_v7  ;;  %v1392_v63 = vadd.f32 1.0, %v2424_v37  ;;  %v1962_v52 = vmul.f32 -1.442695, %v1107_v41  ;;  %v1063_v10 = vpop.xlane.xlu0 %1062  ;;  %v3882_v41 = vld [vmem:[#allocation28_spill] sm:$0xff] }
 0x22a   : > { %v2428_v36 = vpop.eup %2427  ;;  %2447 = vpow2.f32 %v1957_v39  ;;  %v1141_v33 = vadd.f32 %v3401_v32, %v1063_v10  ;;  %v1059_v18 = vpop.xlane.xlu1 %1058  ;;  %v1617_v16 = vadd.f32 %v1616_v47, %v1615_v12  ;;  %v1576_v59 = vmul.f32 %v2426_v13, %v3878_v38 }
 0x22b   : > { %v2430_v23 = vpop.eup %2429  ;;  %v3488_v35 = vmul.f32 %v2428_v36, %v3879_v3  ;;  %2449 = vrcp.f32 %v1392_v63  ;;  %v1139_v34 = vadd.f32 %v3401_v32, %v1059_v18  ;;  %v3884_v36 = vld [vmem:[#allocation26_spill] sm:$0xff] }
 0x22c   : > { %v2432_v8 = vpop.eup %2431  ;;  %v1547_v55 = vmul.f32 %v2430_v23, %v3880_v50  ;;  %2451 = vpow2.f32 %v1964_v29  ;;  %v1996_v42 = vmul.f32 -1.442695, %v1141_v33  ;;  %v1618_v51 = vrot.slane %v1617_v16, 4  ;;  %v3885_v23 = vld [vmem:[#allocation29_spill] sm:$0xff] }
 0x22d   : > { %v2434_v43 = vpop.eup %2433  ;;  %v1356_v46 = vadd.f32 1.0, %v2432_v8  ;;  %2453 = vpow2.f32 %v1962_v52  ;;  %v1994_v54 = vmul.f32 -1.442695, %v1139_v34  ;;  %v997_v0 = vpop.xlane.xlu0 %996  ;;  %v1698_v17 = vsel %vm1602_vm0, %v1576_v59, 0.0 }
 0x22e   : > { %v2436_v6 = vpop.eup %2435  ;;  %v1625_v56 = vsel %vm1602_vm0, %v1547_v55, 0.0  ;;  %v1362_v14 = vadd.f32 1.0, %v2434_v43  ;;  %2455 = vpow2.f32 %v1996_v42  ;;  %v1108_v40 = vadd.f32 %v3401_v32, %v997_v0  ;;  %v1011_v30 = vpop.xlane.xlu1 %1010 }
 0x22f   : > { %v2438_v49 = vpop.eup %2437  ;;  %2457 = vrcp.f32 %v1356_v46  ;;  %v1115_v45 = vadd.f32 %v3401_v32, %v1011_v30  ;;  %v1619_v9 = vadd.f32 %v1618_v51, %v1617_v16  ;;  %v3500_v44 = vadd.f32 %v1698_v17, %v3468_v62 }
 0x230   : > { %v2440_v5 = vpop.eup %2439  ;;  %v1579_v4 = vmul.f32 %v2438_v49, %v3881_v53  ;;  %2459 = vrcp.f32 %v1362_v14  ;;  %v1963_v22 = vmul.f32 -1.442695, %v1108_v40  ;;  %v3514_v33 = vmul.f32 %v2436_v6, %v3884_v36  ;;  %v3886_v40 = vld [vmem:[#allocation20_spill] sm:$0xff] }
 0x231   : > { %v2442_v1 = vpop.eup %2441  ;;  %v1388_v60 = vadd.f32 1.0, %v2440_v5  ;;  %2461 = vpow2.f32 %v1994_v54  ;;  %v1970_v26 = vmul.f32 -1.442695, %v1115_v45  ;;  %v1061_v19 = vpop.xlane.xlu0 %1060  ;;  %v1620_v61 = vrot.slane %v1619_v9, 2 }
 0x232   : > { %v2444_v25 = vpop.eup %2443  ;;  %v1709_v48 = vsel %vm1602_vm0, %v1579_v4, 0.0  ;;  %v1394_v39 = vadd.f32 1.0, %v2442_v1  ;;  %2463 = vpow2.f32 %v1963_v22  ;;  %v1140_v31 = vadd.f32 %v3401_v32, %v1061_v19  ;;  %v1075_v28 = vpop.xlane.xlu1 %1074 }
 0x233   : > { %v2446_v27 = vpop.eup %2445  ;;  %v3504_v7 = vadd.f32 %v1709_v48, %v1708_v21  ;;  %v3507_v62 = vmul.f32 %v2444_v25, %v3882_v41  ;;  %2465 = vrcp.f32 %v1388_v60  ;;  %v1147_v24 = vadd.f32 %v3401_v32, %v1075_v28  ;;  %v3887_v48 = vld [vmem:[#allocation21_spill] sm:$0xff] }
 0x234   : > { %v2448_v37 = vpop.eup %2447  ;;  %v1546_v29 = vmul.f32 %v2446_v27, %v3883_v58  ;;  %2467 = vrcp.f32 %v1394_v39  ;;  %v1995_v12 = vmul.f32 -1.442695, %v1140_v31  ;;  %v1621_v13 = vadd.f32 %v1620_v61, %v1619_v9 }
 0x235   : > { %v2450_v63 = vpop.eup %2449  ;;  %v1358_v52 = vadd.f32 1.0, %v2448_v37  ;;  %2469 = vpow2.f32 %v1970_v26  ;;  %v2002_v10 = vmul.f32 -1.442695, %v1147_v24  ;;  %v1003_v47 = vpop.xlane.xlu0 %1002  ;;  %v3527_v19 = vstv %s3511_s12 }
 0x236   : > { %v2452_v18 = vpop.eup %2451  ;;  %v1624_v16 = vsel %vm1602_vm0, %v1546_v29, 0.0  ;;  %v3518_v38 = vmul.f32 %v2450_v63, %v3885_v23  ;;  %2471 = vpow2.f32 %v1995_v12  ;;  %v1111_v59 = vadd.f32 %v3401_v32, %v1003_v47  ;;  %v1069_v3 = vpop.xlane.xlu1 %1068  ;;  %v3889_v23 = vld [vmem:[#allocation24_spill] sm:$0xff] }
 0x237   : > { %v2454_v34 = vpop.eup %2453  ;;  %v1626_v8 = vadd.f32 %v1625_v56, %v1624_v16  ;;  %2473 = vrcp.f32 %v1358_v52  ;;  %v1365_v50 = vadd.f32 1.0, %v2452_v18  ;;  %v1144_v55 = vadd.f32 %v3401_v32, %v1069_v3 }
 0x238   : > { %v2456_v42 = vpop.eup %2455  ;;  %v1363_v51 = vadd.f32 1.0, %v2454_v34  ;;  %2475 = vpow2.f32 %v2002_v10  ;;  %v1966_v43 = vmul.f32 -1.442695, %v1111_v59  ;;  %v1622_v21 = vrot.slane %v1621_v13, 1  ;;  %v3888_v10 = vld [vmem:[#allocation32_spill] sm:$0xff] }
 0x239   : > { %v2458_v46 = vpop.eup %2457  ;;  %2477 = vrcp.f32 %v1365_v50  ;;  %v1397_v54 = vadd.f32 1.0, %v2456_v42  ;;  %v1999_v0 = vmul.f32 -1.442695, %v1144_v55  ;;  %v1067_v6 = vpop.xlane.xlu0 %1066  ;;  %v1629_v24 = vsel %vm1602_vm0, %v3454_v57, 0.0 }
 0x23a   : > { %v2460_v14 = vpop.eup %2459  ;;  %v1548_v30 = vmul.f32 %v2458_v46, %v3886_v40  ;;  %2479 = vrcp.f32 %v1363_v51  ;;  %v1143_v56 = vadd.f32 %v3401_v32, %v1067_v6  ;;  %v1079_v49 = vpop.xlane.xlu1 %1078  ;;  %v1623_v45 = vadd.f32 %v1622_v21, %v1621_v13 }
 0x23b   : > { %v2462_v9 = vpop.eup %2461  ;;  %2481 = vrcp.f32 %v1397_v54  ;;  %v1149_v17 = vadd.f32 %v3401_v32, %v1079_v49  ;;  %v1554_v47 = vmul.f32 %v2460_v14, %v3888_v10 }
 0x23c   : > { %v2464_v5 = vpop.eup %2463  ;;  %v1627_v53 = vsel %vm1602_vm0, %v1548_v30, 0.0  ;;  %v1395_v4 = vadd.f32 1.0, %v2462_v9  ;;  %2483 = vpow2.f32 %v1966_v43  ;;  %v1998_v22 = vmul.f32 -1.442695, %v1143_v56  ;;  %v3890_v43 = vld [vmem:[#allocation33_spill] sm:$0xff] }
 0x23d   : > { %v2466_v1 = vpop.eup %2465  ;;  %v1628_v60 = vadd.f32 %v1627_v53, %v1626_v8  ;;  %v1364_v26 = vadd.f32 1.0, %v2464_v5  ;;  %2485 = vpow2.f32 %v1999_v0  ;;  %v1001_v61 = vpop.xlane.xlu0 %1000  ;;  %v2004_v31 = vmul.f32 -1.442695, %v1149_v17  ;;  %v3891_v0 = vld [vmem:[#allocation30_spill] sm:$0xff] }
 0x23e   : > { %v2468_v25 = vpop.eup %2467  ;;  %v1580_v39 = vmul.f32 %v2466_v1, %v3887_v48  ;;  %2487 = vrcp.f32 %v1395_v4  ;;  %v1771_v28 = vmul.f32 0.015625, %v1623_v45  ;;  %v1013_v27 = vpop.xlane.xlu1 %1012  ;;  %v1110_v37 = vadd.f32 %v3401_v32, %v1001_v61  ;;  %v3892_v48 = vld [vmem:[#allocation31_spill] sm:$0xff] }
 0x23f   : > { %v2470_v41 = vpop.eup %2469  ;;  %2489 = vrcp.f32 %v1364_v26  ;;  %v1116_v58 = vadd.f32 %v3401_v32, %v1013_v27  ;;  %v1586_v21 = vmul.f32 %v2468_v25, %v3890_v43  ;;  %v1630_v46 = vadd.f32 %v1629_v24, %v1628_v60  ;;  %v3893_v24 = vld [vmem:[#allocation36_spill] sm:$0xff] }
 0x240   : > { %v2472_v29 = vpop.eup %2471  ;;  %v1711_v12 = vsel %vm1602_vm0, %v1580_v39, 0.0  ;;  %v1371_v13 = vadd.f32 1.0, %v2470_v41  ;;  %2491 = vpow2.f32 %v1998_v22  ;;  %v1781_v63 = vadd.f32 %v3527_v19, %v1771_v28 }
 0x241   : > { %v2474_v52 = vpop.eup %2473  ;;  %v3538_v36 = vadd.f32 %v1711_v12, %v3504_v7  ;;  %v1396_v18 = vadd.f32 1.0, %v2472_v29  ;;  %2493 = vpow2.f32 %v2004_v31  ;;  %v1065_v57 = vpop.xlane.xlu0 %1064  ;;  %v1965_v3 = vmul.f32 -1.442695, %v1110_v37 }
 0x242   : > { %v2476_v16 = vpop.eup %2475  ;;  %v1550_v59 = vmul.f32 %v2474_v52, %v3889_v23  ;;  %2495 = vrcp.f32 %v1371_v13  ;;  %1791 = vperm.xlu0 %2331, %v1781_v63   ;;  %v1971_v34 = vmul.f32 -1.442695, %v1116_v58  ;;  %v1077_v8 = vpop.xlane.xlu1 %1076  ;;  %v1142_v42 = vadd.f32 %v3401_v32, %v1065_v57 }
 0x243   : > { %v3541_v50 = vpop.eup %2477  ;;  %2497 = vrcp.f32 %v1396_v18  ;;  %v1403_v55 = vadd.f32 1.0, %v2476_v16  ;;  %v1148_v7 = vadd.f32 %v3401_v32, %v1077_v8  ;;  %v1645_v49 = vsel %vm1602_vm0, %v1554_v47, 0.0 }
 0x244   : > { %v2480_v51 = vpop.eup %2479  ;;  %2499 = vpow2.f32 %v1965_v3  ;;  %v1997_v14 = vmul.f32 -1.442695, %v1142_v42  ;;  %v1631_v45 = vsel %vm1602_vm0, %v1550_v59, 0.0  ;;  %v1729_v60 = vsel %vm1602_vm0, %v1586_v21, 0.0  ;;  %v3894_v42 = vld [vmem:[#allocation37_spill] sm:$0xff] }
 0x245   : > { %v3546_v54 = vpop.eup %2481  ;;  %v1555_v6 = vmul.f32 %v2480_v51, %v3891_v0  ;;  %2501 = vrcp.f32 %v1403_v55  ;;  %v2003_v40 = vmul.f32 -1.442695, %v1148_v7  ;;  %v1007_v30 = vpop.xlane.xlu0 %1006  ;;  %v1632_v12 = vadd.f32 %v1631_v45, %v1630_v46 }
 0x246   : > { %v2484_v56 = vpop.eup %2483  ;;  %2503 = vpow2.f32 %v1971_v34  ;;  %v1113_v9 = vadd.f32 %v3401_v32, %v1007_v30  ;;  %v1019_v17 = vpop.xlane.xlu1 %1018  ;;  %v1713_v59 = vsel %vm1602_vm0, %v3465_v20, 0.0  ;;  %v1633_v20 = vsel %vm1602_vm0, %v3473_v2, 0.0 }
 0x247   : > { %v2486_v5 = vpop.eup %2485  ;;  %v1646_v53 = vsel %vm1602_vm0, %v1555_v6, 0.0  ;;  %v1367_v4 = vadd.f32 1.0, %v2484_v56  ;;  %2505 = vpow2.f32 %v1997_v14  ;;  %v1119_v22 = vadd.f32 %v3401_v32, %v1019_v17 }
 0x248   : > { %v2488_v1 = vpop.eup %2487  ;;  %v1647_v26 = vadd.f32 %v1646_v53, %v1645_v49  ;;  %v1400_v61 = vadd.f32 1.0, %v2486_v5  ;;  %2507 = vpow2.f32 %v2003_v40  ;;  %v1968_v31 = vmul.f32 -1.442695, %v1113_v9 }
 0x249   : > { %v2490_v25 = vpop.eup %2489  ;;  %v1587_v39 = vmul.f32 %v2488_v1, %v3892_v48  ;;  %2509 = vrcp.f32 %v1367_v4  ;;  %v1974_v28 = vmul.f32 -1.442695, %v1119_v22  ;;  %v1005_v27 = vpop.xlane.xlu0 %1004  ;;  %v1717_v56 = vsel %vm1602_vm0, %v3481_v11, 0.0 }
 0x24a   : > { %v2492_v41 = vpop.eup %2491  ;;  %v1556_v37 = vmul.f32 %v2490_v25, %v3893_v24  ;;  %2511 = vrcp.f32 %v1400_v61  ;;  %v1112_v58 = vadd.f32 %v3401_v32, %v1005_v27  ;;  %v1083_v29 = vpop.xlane.xlu1 %1082  ;;  %v1715_v45 = vsel %vm1602_vm0, %v3488_v35, 0.0 }
 0x24b   : > { %v2494_v13 = vpop.eup %2493  ;;  %v1730_v63 = vsel %vm1602_vm0, %v1587_v39, 0.0  ;;  %v1399_v52 = vadd.f32 1.0, %v2492_v41  ;;  %2513 = vpow2.f32 %v1968_v31  ;;  %v1151_v10 = vadd.f32 %v3401_v32, %v1083_v29 }
 0x24c   : > { %v3560_v47 = vpop.eup %2495  ;;  %v1731_v18 = vadd.f32 %v1730_v63, %v1729_v60  ;;  %v1648_v57 = vsel %vm1602_vm0, %v1556_v37, 0.0  ;;  %v1405_v16 = vadd.f32 1.0, %v2494_v13  ;;  %2515 = vpow2.f32 %v1974_v28 }
 0x24d   : > { %v2498_v23 = vpop.eup %2497  ;;  %v3565_v3 = vadd.f32 %v1648_v57, %v1647_v26  ;;  %2517 = vrcp.f32 %v1399_v52  ;;  %v1967_v34 = vmul.f32 -1.442695, %v1112_v58  ;;  %v1009_v8 = vpop.xlane.xlu0 %1008  ;;  %v2006_v51 = vmul.f32 -1.442695, %v1151_v10 }
 0x24e   : > { %v2500_v55 = vpop.eup %2499  ;;  %v1588_v7 = vmul.f32 %v2498_v23, %v3894_v42  ;;  %2519 = vrcp.f32 %v1405_v16  ;;  %v1114_v43 = vadd.f32 %v3401_v32, %v1009_v8  ;;  %v1017_v21 = vpop.xlane.xlu1 %1016  ;;  %v1634_v61 = vadd.f32 %v1633_v20, %v1632_v12 }
 0x24f   : > { %v3569_v46 = vpop.eup %2501  ;;  %v1366_v0 = vadd.f32 1.0, %v2500_v55  ;;  %2521 = vpow2.f32 %v1967_v34  ;;  %v1118_v6 = vadd.f32 %v3401_v32, %v1017_v21  ;;  %v1635_v48 = vsel %vm1602_vm0, %v3507_v62, 0.0 }
 0x250   : > { %v2504_v14 = vpop.eup %2503  ;;  %v1732_v40 = vsel %vm1602_vm0, %v1588_v7, 0.0  ;;  %2523 = vpow2.f32 %v2006_v51  ;;  %v1969_v30 = vmul.f32 -1.442695, %v1114_v43  ;;  %v1714_v39 = vadd.f32 %v1713_v59, %v3538_v36  ;;  %v3895_v7 = vld [vmem:[#allocation34_spill] sm:$0xff] }
 0x251   : > { %v2506_v49 = vpop.eup %2505  ;;  %v3579_v9 = vadd.f32 %v1732_v40, %v1731_v18  ;;  %2525 = vrcp.f32 %v1366_v0  ;;  %v1372_v17 = vadd.f32 1.0, %v2504_v14  ;;  %v1073_v5 = vpop.xlane.xlu0 %1072  ;;  %v1973_v2 = vmul.f32 -1.442695, %v1118_v6  ;;  %v3896_v6 = vld [vmem:[#allocation35_spill] sm:$0xff] }
 0x252   : > { %v2508_v53 = vpop.eup %2507  ;;  %v1398_v4 = vadd.f32 1.0, %v2506_v49  ;;  %2527 = vpow2.f32 %v1969_v30  ;;  %v1146_v22 = vadd.f32 %v3401_v32, %v1073_v5  ;;  %v1081_v1 = vpop.xlane.xlu1 %1080  ;;  %v1636_v41 = vadd.f32 %v1635_v48, %v1634_v61 }
 0x253   : > { %v3582_v60 = vpop.eup %2509  ;;  %2529 = vrcp.f32 %v1372_v17  ;;  %v1404_v11 = vadd.f32 1.0, %v2508_v53  ;;  %v1150_v26 = vadd.f32 %v3401_v32, %v1081_v1  ;;  %v1637_v24 = vsel %vm1602_vm0, %v3514_v33, 0.0 }
 0x254   : > { %v3585_v35 = vpop.eup %2511  ;;  %2531 = vrcp.f32 %v1398_v4  ;;  %v2001_v25 = vmul.f32 -1.442695, %v1146_v22  ;;  %v1716_v13 = vadd.f32 %v1715_v45, %v1714_v39  ;;  %v3596_v52 = vadd.f32 %v1637_v24, %v1636_v41  ;;  %v3899_v41 = vld [vmem:[#allocation41_spill] sm:$0xff] }
 0x255   : > { %v2514_v31 = vpop.eup %2513  ;;  %2533 = vrcp.f32 %v1404_v11  ;;  %v2005_v28 = vmul.f32 -1.442695, %v1150_v26  ;;  %v1015_v27 = vpop.xlane.xlu0 %1014  ;;  %v1557_v51 = vmul.f32 %v3541_v50, %v3895_v7  ;;  %v1589_v20 = vmul.f32 %v3546_v54, %v3896_v6  ;;  %v3897_v54 = vld [vmem:[#allocation40_spill] sm:$0xff]  ;;  %v3898_v11 = vld [vmem:[#allocation46_spill] sm:$0xff] }
 0x256   : > { %v2516_v37 = vpop.eup %2515  ;;  %v1369_v58 = vadd.f32 1.0, %v2514_v31  ;;  %2535 = vpow2.f32 %v1973_v2  ;;  %v1117_v29 = vadd.f32 %v3401_v32, %v1015_v27  ;;  %v1023_v12 = vpop.xlane.xlu1 %1022  ;;  %v1718_v33 = vadd.f32 %v1717_v56, %v1716_v13 }
 0x257   : > { %v3593_v63 = vpop.eup %2517  ;;  %v1375_v62 = vadd.f32 1.0, %v2516_v37  ;;  %2537 = vpow2.f32 %v2001_v25  ;;  %v1121_v36 = vadd.f32 %v3401_v32, %v1023_v12  ;;  %v1719_v40 = vsel %vm1602_vm0, %v3518_v38, 0.0 }
 0x258   : > { %v3598_v10 = vpop.eup %2519  ;;  %2539 = vrcp.f32 %v1369_v58  ;;  %v1972_v18 = vmul.f32 -1.442695, %v1117_v29  ;;  %v3610_v50 = vadd.f32 %v1719_v40, %v1718_v33  ;;  %v1650_v1 = vsel %vm1602_vm0, %v1557_v51, 0.0 }
 0x259   : > { %v2522_v57 = vpop.eup %2521  ;;  %2541 = vrcp.f32 %v1375_v62  ;;  %v1039_v16 = vpop.xlane.xlu0 %1038  ;;  %v1976_v34 = vmul.f32 -1.442695, %v1121_v36  ;;  %v1563_v26 = vmul.f32 %v3560_v47, %v3898_v11  ;;  %v1734_v48 = vsel %vm1602_vm0, %v1589_v20, 0.0  ;;  %v3900_v47 = vld [vmem:[#allocation38_spill] sm:$0xff] }
 0x25a   : > { %v2524_v23 = vpop.eup %2523  ;;  %v1368_v59 = vadd.f32 1.0, %v2522_v57  ;;  %2543 = vpow2.f32 %v2005_v28  ;;  %v1129_v8 = vadd.f32 %v3401_v32, %v1039_v16  ;;  %v1021_v55 = vpop.xlane.xlu1 %1020  ;;  %v1559_v13 = vmul.f32 %v3582_v60, %v3900_v47 }
 0x25b   : > { %v2526_v42 = vpop.eup %2525  ;;  %v1407_v43 = vadd.f32 1.0, %v2524_v23  ;;  %2545 = vpow2.f32 %v1972_v18  ;;  %v1120_v21 = vadd.f32 %v3401_v32, %v1021_v55  ;;  %v1667_v33 = vsel %vm1602_vm0, %v1563_v26, 0.0 }
 0x25c   : > { %v2528_v0 = vpop.eup %2527  ;;  %2547 = vrcp.f32 %v1368_v59  ;;  %v1984_v14 = vmul.f32 -1.442695, %v1129_v8  ;;  %v1558_v2 = vmul.f32 %v2526_v42, %v3897_v54  ;;  %v1651_v16 = vadd.f32 %v1650_v1, %v3565_v3  ;;  %v3901_v59 = vld [vmem:[#allocation39_spill] sm:$0xff] }
 0x25d   : > { %v3608_v30 = vpop.eup %2529  ;;  %2549 = vrcp.f32 %v1407_v43  ;;  %v1370_v56 = vadd.f32 1.0, %v2528_v0  ;;  %v1975_v49 = vmul.f32 -1.442695, %v1120_v21  ;;  %v1055_v45 = vpop.xlane.xlu0 %1054  ;;  %v3902_v43 = vld [vmem:[#allocation44_spill] sm:$0xff]  ;;  %v3903_v0 = vld [vmem:[#allocation42_spill] sm:$0xff]  ;;  %v1654_v6 = vsel %vm1602_vm0, %v1559_v13, 0.0 }
 0x25e   : > { %v2532_v17 = vpop.eup %2531  ;;  %2551 = vpow2.f32 %v1976_v34  ;;  %v1137_v5 = vadd.f32 %v3401_v32, %v1055_v45  ;;  %v1085_v53 = vpop.xlane.xlu1 %1084  ;;  %v1652_v62 = vsel %vm1602_vm0, %v1558_v2, 0.0  ;;  %v1591_v34 = vmul.f32 %v3593_v63, %v3901_v59  ;;  %v3904_v63 = vld [vmem:[#allocation47_spill] sm:$0xff]  ;;  %v3905_v45 = vld [vmem:[#allocation45_spill] sm:$0xff]  ;;  %v3906_v2 = vld [vmem:[#allocation52_spill] sm:$0xff] }
 0x25f   : > { %v3613_v4 = vpop.eup %2533  ;;  %2553 = vrcp.f32 %v1370_v56  ;;  %v1152_v38 = vadd.f32 %v3401_v32, %v1085_v53  ;;  %v1590_v24 = vmul.f32 %v2532_v17, %v3899_v41  ;;  %v1735_v56 = vadd.f32 %v1734_v48, %v3579_v9 }
 0x260   : > { %v2536_v22 = vpop.eup %2535  ;;  %2555 = vpow2.f32 %v1984_v14  ;;  %v1992_v61 = vmul.f32 -1.442695, %v1137_v5  ;;  %v1595_v14 = vmul.f32 %v3569_v46, %v3904_v63  ;;  %v1592_v17 = vmul.f32 %v3585_v35, %v3905_v45  ;;  %v3913_v63 = vld [vmem:[#allocation54_spill] sm:$0xff] }
 0x261   : > { %v2538_v25 = vpop.eup %2537  ;;  %v1374_v39 = vadd.f32 1.0, %v2536_v22  ;;  %2557 = vpow2.f32 %v1975_v49  ;;  %v2007_v31 = vmul.f32 -1.442695, %v1152_v38  ;;  %v1071_v28 = vpop.xlane.xlu0 %1070  ;;  %v1736_v42 = vsel %vm1602_vm0, %v1590_v24, 0.0  ;;  %v3907_v22 = vld [vmem:[#allocation49_spill] sm:$0xff] }
 0x262   : > { %v2540_v27 = vpop.eup %2539  ;;  %v1402_v37 = vadd.f32 1.0, %v2538_v25  ;;  %2559 = vpow2.f32 %v1992_v61  ;;  %v1145_v58 = vadd.f32 %v3401_v32, %v1071_v28  ;;  %v1087_v29 = vpop.xlane.xlu1 %1086  ;;  %v1564_v38 = vmul.f32 %v3608_v30, %v3906_v2 }
 0x263   : > { %v3623_v12 = vpop.eup %2541  ;;  %2561 = vrcp.f32 %v1374_v39  ;;  %v1153_v36 = vadd.f32 %v3401_v32, %v1087_v29  ;;  %v1653_v32 = vadd.f32 %v1652_v62, %v1651_v16  ;;  %v1561_v3 = vmul.f32 %v2540_v27, %v3903_v0  ;;  %v3908_v62 = vld [vmem:[#allocation53_spill] sm:$0xff]  ;;  %v3911_v0 = vld [vmem:[#allocation56_spill] sm:$0xff] }
 0x264   : > { %v2544_v18 = vpop.eup %2543  ;;  %2563 = vrcp.f32 %v1402_v37  ;;  %v2000_v57 = vmul.f32 -1.442695, %v1145_v58  ;;  %v1737_v46 = vadd.f32 %v1736_v42, %v1735_v56  ;;  %v1738_v25 = vsel %vm1602_vm0, %v1591_v34, 0.0  ;;  %v3910_v42 = vld [vmem:[#allocation50_spill] sm:$0xff]  ;;  %v3914_v56 = vld [vmem:[#allocation57_spill] sm:$0xff] }
 0x265   : > { %v2546_v23 = vpop.eup %2545  ;;  %v1406_v8 = vadd.f32 1.0, %v2544_v18  ;;  %2565 = vpow2.f32 %v2007_v31  ;;  %v2008_v55 = vmul.f32 -1.442695, %v1153_v36  ;;  %v1655_v40 = vadd.f32 %v1654_v6, %v1653_v32  ;;  %v3909_v18 = vld [vmem:[#allocation48_spill] sm:$0xff]  ;;  %v3912_v6 = vld [vmem:[#allocation51_spill] sm:$0xff] }
 0x266   : > { %v2548_v60 = vpop.eup %2547  ;;  %v1373_v7 = vadd.f32 1.0, %v2546_v23  ;;  %2567 = vpow2.f32 %v2000_v57  ;;  %v1658_v9 = vsel %vm1602_vm0, %v1561_v3, 0.0  ;;  %v1739_v28 = vadd.f32 %v1738_v25, %v1737_v46  ;;  %v3916_v46 = vld [vmem:[#allocation13_spill] sm:$0xff] }
 0x267   : > { %v3634_v51 = vpop.eup %2549  ;;  %v1560_v21 = vmul.f32 %v2548_v60, %v3902_v43  ;;  %2569 = vrcp.f32 %v1406_v8  ;;  %v1740_v24 = vsel %vm1602_vm0, %v1592_v17, 0.0  ;;  %v1669_v58 = vsel %vm1602_vm0, %v1564_v38, 0.0 }
 0x268   : > { %v2552_v20 = vpop.eup %2551  ;;  %2571 = vrcp.f32 %v1373_v7  ;;  %v1639_v29 = vrot.slane %v3596_v52, 4  ;;  %v3656_v47 = vadd.f32 %v1740_v24, %v1739_v28  ;;  %v1596_v36 = vmul.f32 %v3613_v4, %v3908_v62 }
 0x269   : > { %v2554_v49 = vpop.eup %2553  ;;  %v1377_v5 = vadd.f32 1.0, %v2552_v20  ;;  %2573 = vpow2.f32 %v2008_v55  ;;  %v1656_v53 = vsel %vm1602_vm0, %v1560_v21, 0.0  ;;  %v1751_v34 = vsel %vm1602_vm0, %v1595_v14, 0.0 }
 0x26a   : > { %v2556_v54 = vpop.eup %2555  ;;  %v1562_v1 = vmul.f32 %v2554_v49, %v3907_v22  ;;  %v1657_v11 = vadd.f32 %v1656_v53, %v1655_v40  ;;  %v1597_v7 = vmul.f32 %v3598_v10, %v3910_v42  ;;  %v1640_v4 = vadd.f32 %v1639_v29, %v3596_v52 }
 0x26b   : > { %v2558_v26 = vpop.eup %2557  ;;  %2575 = vrcp.f32 %v1377_v5  ;;  %v1385_v61 = vadd.f32 1.0, %v2556_v54  ;;  %v1753_v21 = vsel %vm1602_vm0, %v1596_v36, 0.0  ;;  %v1567_v14 = vmul.f32 %v3623_v12, %v3913_v63  ;;  %v3915_v5 = vld [vmem:[#allocation55_spill] sm:$0xff] }
 0x26c   : > { %v2560_v35 = vpop.eup %2559  ;;  %v1666_v48 = vsel %vm1602_vm0, %v1562_v1, 0.0  ;;  %v1376_v39 = vadd.f32 1.0, %v2558_v26  ;;  %v3651_v31 = vadd.f32 %v1658_v9, %v1657_v11  ;;  %v1755_v52 = vsel %vm1602_vm0, %v1597_v7, 0.0 }
 0x26d   : > { %v2562_v27 = vpop.eup %2561  ;;  %v1668_v30 = vadd.f32 %v1667_v33, %v1666_v48  ;;  %2577 = vrcp.f32 %v1385_v61  ;;  %v1393_v41 = vadd.f32 1.0, %v2560_v35  ;;  %v1599_v53 = vmul.f32 %v3634_v51, %v3915_v5  ;;  %v3917_v35 = vld [vmem:[#allocation60_spill] sm:$0xff] }
 0x26e   : > { %v2564_v37 = vpop.eup %2563  ;;  %2579 = vrcp.f32 %v1376_v39  ;;  %v1566_v3 = vmul.f32 %v2562_v27, %v3911_v0  ;;  %v1641_v22 = vrot.slane %v1640_v4, 2  ;;  %v1675_v9 = vsel %vm1602_vm0, %v1567_v14, 0.0  ;;  %v3918_v39 = vld [vmem:[#allocation58_spill] sm:$0xff] }
 0x26f   : > { %v2566_v13 = vpop.eup %2565  ;;  %v1594_v57 = vmul.f32 %v2564_v37, %v3909_v18  ;;  %v1670_v16 = vadd.f32 %v1669_v58, %v1668_v30  ;;  %2581 = vrcp.f32 %v1393_v41  ;;  %v1660_v51 = vrot.slane %v3651_v31, 4  ;;  %v3919_v41 = vld [vmem:[#allocation27_spill] sm:$0xff] }
 0x270   : > { %v2568_v33 = vpop.eup %2567  ;;  %v1408_v23 = vadd.f32 1.0, %v2566_v13  ;;  %v1673_v38 = vsel %vm1602_vm0, %v1566_v3, 0.0  ;;  %v1759_v58 = vsel %vm1602_vm0, %v1599_v53, 0.0 }
 0x271   : > { %v2570_v59 = vpop.eup %2569  ;;  %v1750_v8 = vsel %vm1602_vm0, %v1594_v57, 0.0  ;;  %v1401_v55 = vadd.f32 1.0, %v2568_v33 }
 0x272   : > { %v2572_v60 = vpop.eup %2571  ;;  %v1752_v32 = vadd.f32 %v1751_v34, %v1750_v8  ;;  %2583 = vrcp.f32 %v1408_v23  ;;  %v1598_v49 = vmul.f32 %v2570_v59, %v3914_v56  ;;  %v1642_v8 = vadd.f32 %v1641_v22, %v1640_v4 }
 0x273   : > { %v2574_v43 = vpop.eup %2573  ;;  %v1565_v20 = vmul.f32 %v2572_v60, %v3912_v6  ;;  %2585 = vrcp.f32 %v1401_v55  ;;  %v1661_v55 = vadd.f32 %v1660_v51, %v3651_v31  ;;  %v3920_v60 = vld [vmem:[#allocation43_spill] sm:$0xff] }
 0x274   : > { %v1754_v40 = vadd.f32 %v1753_v21, %v1752_v32  ;;  %v1409_v45 = vadd.f32 1.0, %v2574_v43  ;;  %v1757_v11 = vsel %vm1602_vm0, %v1598_v49, 0.0  ;;  %v1643_v4 = vrot.slane %v1642_v8, 1 }
 0x275   : > { %v2576_v10 = vpop.eup %2575  ;;  %v1671_v17 = vsel %vm1602_vm0, %v1565_v20, 0.0  ;;  %v3921_v20 = vld [vmem:[#allocation59_spill] sm:$0xff]  ;;  %v1662_v14 = vrot.slane %v1661_v55, 2 }
 0x276   : > { %v1672_v54 = vadd.f32 %v1671_v17, %v1670_v16  ;;  %2587 = vrcp.f32 %v1409_v45  ;;  %v1756_v1 = vadd.f32 %v1755_v52, %v1754_v40  ;;  %v1569_v28 = vmul.f32 %v2576_v10, %v3918_v39 }
 0x277   : > { %v2578_v2 = vpop.eup %2577  ;;  %v1644_v53 = vadd.f32 %v1643_v4, %v1642_v8 }
 0x278   : > { %v2580_v12 = vpop.eup %2579  ;;  %v1577_v26 = vmul.f32 %v2578_v2, %v3916_v46  ;;  %v1674_v61 = vadd.f32 %v1673_v38, %v1672_v54  ;;  %v1758_v27 = vadd.f32 %v1757_v11, %v1756_v1  ;;  %v1679_v34 = vsel %vm1602_vm0, %v1569_v28, 0.0 }
 0x279   : > { %v2582_v25 = vpop.eup %2581  ;;  %v1568_v48 = vmul.f32 %v2580_v12, %v3917_v35  ;;  %v1663_v54 = vadd.f32 %v1662_v14, %v1661_v55  ;;  %v1772_v11 = vmul.f32 0.015625, %v1644_v53 }
 0x27a   : > { %v1700_v30 = vsel %vm1602_vm0, %v1577_v26, 0.0  ;;  %v1585_v24 = vmul.f32 %v2582_v25, %v3919_v41  ;;  %v1676_v37 = vadd.f32 %v1675_v9, %v1674_v61  ;;  %v1760_v62 = vadd.f32 %v1759_v58, %v1758_v27 }
 0x27b   : > { %v1701_v29 = vadd.f32 %v1700_v30, %v3500_v44  ;;  %v1677_v13 = vsel %vm1602_vm0, %v1568_v48, 0.0  ;;  %v1664_v46 = vrot.slane %v1663_v54, 1  ;;  %v1782_v48 = vadd.f32 %v3527_v19, %v1772_v11 }
 0x27c   : > { %v2584_v36 = vpop.eup %2583  ;;  %v1721_v18 = vsel %vm1602_vm0, %v1585_v24, 0.0  ;;  %v1678_v57 = vadd.f32 %v1677_v13, %v1676_v37 }
 0x27d   : > { %v2586_v16 = vpop.eup %2585  ;;  %v1600_v33 = vmul.f32 %v2584_v36, %v3366_v15  ;;  %v1702_v23 = vrot.slane %v1701_v29, 4  ;;  %v1722_v59 = vadd.f32 %v1721_v18, %v3610_v50  ;;  %v1665_v51 = vadd.f32 %v1664_v46, %v1663_v54 }
 0x27e   : > { %v1593_v44 = vmul.f32 %v2586_v16, %v3920_v60  ;;  %v1680_v42 = vadd.f32 %v1679_v34, %v1678_v57 }
 0x27f   : > { %v1703_v7 = vadd.f32 %v1702_v23, %v1701_v29  ;;  %v1723_v32 = vrot.slane %v1722_v59, 4  ;;  %v1761_v43 = vsel %vm1602_vm0, %v1600_v33, 0.0  ;;  %v1773_v41 = vmul.f32 0.015625, %v1665_v51 }
 0x280   : > { %v2588_v21 = vpop.eup %2587  ;;  %v1742_v0 = vsel %vm1602_vm0, %v1593_v44, 0.0  ;;  %v1762_v3 = vadd.f32 %v1761_v43, %v1760_v62  ;;  %v1681_v31 = vrot.slane %v1680_v42, 4 }
 0x281   : > { %v1704_v15 = vrot.slane %v1703_v7, 2  ;;  %v1724_v6 = vadd.f32 %v1723_v32, %v1722_v59  ;;  %v1743_v50 = vadd.f32 %v1742_v0, %v3656_v47  ;;  %v1601_v63 = vmul.f32 %v2588_v21, %v3921_v20 }
 0x282   : > { %v1682_v2 = vadd.f32 %v1681_v31, %v1680_v42  ;;  %v1783_v13 = vadd.f32 %v3527_v19, %v1773_v41 }
 0x283   : > { %v1705_v40 = vadd.f32 %v1704_v15, %v1703_v7  ;;  %v1725_v56 = vrot.slane %v1724_v6, 2  ;;  %v1744_v49 = vrot.slane %v1743_v50, 4  ;;  %v1763_v45 = vsel %vm1602_vm0, %v1601_v63, 0.0 }
 0x284   : > { %v1764_v10 = vadd.f32 %v1763_v45, %v1762_v3  ;;  %v1683_v26 = vrot.slane %v1682_v2, 2 }
 0x285   : > { %v1706_v17 = vrot.slane %v1705_v40, 1  ;;  %v1726_v52 = vadd.f32 %v1725_v56, %v1724_v6  ;;  %v1745_v5 = vadd.f32 %v1744_v49, %v1743_v50 }
 0x286   : > { %v1765_v1 = vrot.slane %v1764_v10, 4  ;;  %v1684_v27 = vadd.f32 %v1683_v26, %v1682_v2 }
 0x287   : > { %v1707_v38 = vadd.f32 %v1706_v17, %v1705_v40  ;;  %v1727_v22 = vrot.slane %v1726_v52, 1  ;;  %v1746_v47 = vrot.slane %v1745_v5, 2 }
 0x288   : > { %v1766_v35 = vadd.f32 %v1765_v1, %v1764_v10  ;;  %v1685_v58 = vrot.slane %v1684_v27, 1 }
 0x289   : > { %v1775_v12 = vmul.f32 0.015625, %v1707_v38  ;;  %v1728_v9 = vadd.f32 %v1727_v22, %v1726_v52  ;;  %v1747_v25 = vadd.f32 %v1746_v47, %v1745_v5 }
 0x28a   : > { %v1767_v30 = vrot.slane %v1766_v35, 2  ;;  %v1686_v36 = vadd.f32 %v1685_v58, %v1684_v27 }
 0x28b   : > { %v1785_v61 = vadd.f32 %v3527_v19, %v1775_v12  ;;  %v1776_v39 = vmul.f32 0.015625, %v1728_v9  ;;  %v1748_v28 = vrot.slane %v1747_v25, 1 }
 0x28c   : > { %v1768_v29 = vadd.f32 %v1767_v30, %v1766_v35  ;;  %v1774_v16 = vmul.f32 0.015625, %v1686_v36 }
 0x28d   : > { %1807 = vperm.xlu1 %2332, %v1785_v61   ;;  %v1786_v24 = vadd.f32 %v3527_v19, %v1776_v39  ;;  %v1749_v37 = vadd.f32 %v1748_v28, %v1747_v25 }
 0x28e   : > { %v1769_v18 = vrot.slane %v1768_v29, 1  ;;  %v1784_v23 = vadd.f32 %v3527_v19, %v1774_v16 }
 0x28f   : > { %v1777_v62 = vmul.f32 0.015625, %v1749_v37 }
 0x290   : > { %v1770_v33 = vadd.f32 %v1769_v18, %v1768_v29 }
 0x291   : > { %1795 = vperm.xlu1 %2332, %v1782_v48   ;;  %v1787_v57 = vadd.f32 %v3527_v19, %v1777_v62 }
 0x292   : > { %v1778_v59 = vmul.f32 0.015625, %v1770_v33 }
 0x294   : > { %v1788_v34 = vadd.f32 %v3527_v19, %v1778_v59 }
 0x295   : > { %1811 = vperm.xlu1 %2332, %v1786_v24  }
 0x299   : > { %1799 = vperm.xlu1 %2332, %v1783_v13  }
 0x29d   : > { %1815 = vperm.xlu1 %2332, %v1787_v57  }
 0x2a1   : > { %1803 = vperm.xlu1 %2332, %v1784_v23  }
 0x2a5   : > { %1819 = vperm.xlu1 %2332, %v1788_v34  }
 0x2c1   : > { %v1792_v7 = vpop.permute.xlu0 %1791 }
 0x30c   : > { %v1808_v8 = vpop.permute.xlu1 %1807 }
 0x310   : > { %v1796_v55 = vpop.permute.xlu1 %1795 }
 0x311   : > { %v1822_v32 = vsel %vm1821_vm1, %v1796_v55, %v1792_v7 }
 0x314   : > { %v1812_v60 = vpop.permute.xlu1 %1811 }
 0x318   : > { %v1800_v44 = vpop.permute.xlu1 %1799 }
 0x319   : > { %v1824_v43 = vsel %vm1823_vm2, %v1800_v44, %v1822_v32 }
 0x31c   : > { %v1816_v42 = vpop.permute.xlu1 %1815 }
 0x320   : > { %v1804_v21 = vpop.permute.xlu1 %1803 }
 0x321   : > { %v1826_v0 = vsel %vm1825_vm3, %v1804_v21, %v1824_v43 }
 0x322   : > { %v1828_v19 = vsel %vm1827_vm4, %v1808_v8, %v1826_v0 }
 0x323   : > { %v1830_v3 = vsel %vm1829_vm5, %v1812_v60, %v1828_v19 }
 0x324   : > { %v1832_v15 = vsel %vm1831_vm6, %v1816_v42, %v1830_v3  ;;  %v1820_v6 = vpop.permute.xlu1 %1819 }
 0x325   : > { %v1834_v50 = vsel %vm1833_vm7, %v1820_v6, %v1832_v15 }
 0x326   : > { %1836 = vst [vmem:[%s287_s17] sm:$0xff] %v1834_v50 }
 0x327   : > { %2660 = shalt.err (!%p2657_p7)
}
 0x328   : > { %s2661_s21 = scalar_lea.hbm %s3711_s24, 128  ;;  %s2665_s23 = scalar_lea.hbm %s3761_s6, 256 }
 0x329   : > { %p2662_p9 = scmp.ne.s32.totalorder %s3711_s24, %s2661_s21  ;;  %p2666_p5 = scmp.lt.u32.totalorder %s3711_s24, %s3761_s6 }
 0x32a   : > { %p2667_p11 = scmp.lt.u32.totalorder %s2665_s23, %s2661_s21  ;;  %p2669_p4 = scmp.lt.u32.totalorder %s2661_s21, %s3711_s24 }
 0x32b   : > { %p2663_p1 = pnand %p2662_p9, %p2860_p12 }
 0x32c   : > { %p2668_p2 = por %p2667_p11, %p2666_p5 }
 0x32d   : > { %p2664_p0 = pneg %p2663_p1 }
 0x32e   : > { %p2670_p6 = por %p2669_p4, %p2668_p2 }
 0x330   : > { %p2671_p8 = pnand %p2670_p6, %p2664_p0 }
 0x332   : > { %2674 = shalt.err (!%p2671_p8)
}
 0x333   : > { %2277 = dma.vmem_to_hbm [thread:$0]  (%p2860_p12), %s3713_s10, 128, %s3711_s24, %s1838_s4  }
 0x334 PF: > { %s1863_s13 = sand.u32 1, %s2705_s25   ;;  %p3922_p10 = scmp.ne.s32.totalorder %s3814_s30, 0 }
 0x335   : > { %p3923_p13 = scmp.ge.s32.totalorder %s2717_s28, 2  ;;  %s1864_s20 = scalar_lea.sflag [#allocation6], %s1863_s13 }
 0x337   : > { %p2288_p3 = pnand %p3923_p13, %p3922_p10 }
 0x339   : > { %2700 = dma.done.wait (!%p2288_p3), %s1864_s20, 128  }
 0x33a   : > { %2702 = vsyncadd (!%p2288_p3), %s1864_s20, 4294967168  ;;  %p22_p7 = scmp.ge.s32.totalorder %s2822_s11, 4   ;;  %s3924_s25 = smov %s2709_s26 }
 0x33b   : > { %s3925_s26 = smov %s2713_s27  ;;  %s3926_s27 = smov %s2856_s8 }
 0x33c   : > { %s3927_s28 = smov %s2822_s11  ;;  %24 = sbr.rel (!%p22_p7) target bundleno = 9 (0x9), region = 93 }
 0x343   :  { %1869 = vsyncpa [#allocation5], 1 }
 0x344   :  { %1871 = vsyncpa [#allocation5 + $0x1], 1 }
 0x345   :  { %1872 = vsyncpa [#allocation8], 1 }
 0x346   :  { %1873 = vsyncpa [#allocation6], 1 }
 0x347   :  { %1875 = vsyncpa [#allocation6 + $0x1], 1 }

</bundles_post_ra>
